<compile_context>
chip_gen: v5e
topology: v5e:2x2
jax: 0.10.0
libtpu: 0.0.40
codegen_flags: <defaults>
</compile_context>

<pallas_src>
import functools

import numpy as np
import jax
import jax.numpy as jnp
from jax import lax
from jax.experimental import pallas as pl
from jax.experimental.pallas import tpu as pltpu


# ----------------------------------------------------------------------------
# helpers
# ----------------------------------------------------------------------------
def _round_up(v, m):
    return (v + m - 1) // m * m


def _rotate_rows(x, shift, n):
    """out[j] = x[(j - shift) % n] along axis 0 (== jnp.roll(x, shift, axis=0)).

    `shift` is a Python int, so this lowers to two static sublane slices and a
    concatenate (semantics guaranteed, no dynamic rotate needed).
    """
    shift = shift % n
    if shift == 0:
        return x
    return jnp.concatenate([x[n - shift:, :], x[:n - shift, :]], axis=0)


# ----------------------------------------------------------------------------
# Fused InputBlock kernel (one grid step == one batch element)
# ----------------------------------------------------------------------------
def _input_block_kernel(const_ref, dl_ref, wsty_ref, bsty_ref, noise_ref,
                        wconv_ref, bconv_ref, o_ref, *,
                        H, W, style_wscale, conv_wmul, b_mul, eps, neg_slope):
    HW, Cp = const_ref.shape

    def epilogue(x, noise_nw, st):
        # NoiseLayer: per-pixel noise * per-channel weight (outer product
        # precomputed in the wrapper -> plain VPU add here).
        x = x + noise_nw
        # LeakyReLU(0.2)
        x = jnp.maximum(x, neg_slope * x)
        # InstanceNorm2d (affine=False, biased variance over the spatial axis)
        mean = jnp.mean(x, axis=0, keepdims=True)
        var = jnp.mean(jnp.square(x - mean), axis=0, keepdims=True)
        x = (x - mean) * lax.rsqrt(var + eps)
        # StyleMod: x * (ys + 1) + yb     (ys = st[:, :Cp], yb = st[:, Cp:])
        return x * (st[:, :Cp] + 1.0) + st[:, Cp:]

    # ---- style vectors for both epilogues (EqualizedLinear, f32 MXU) --------
    dl = dl_ref[0]                                                   # (2, Dp)
    st1 = jnp.dot(dl[0:1, :], wsty_ref[0], preferred_element_type=jnp.float32)
    st1 = st1 * style_wscale + bsty_ref[0:1, :] * b_mul              # (1, 2Cp)
    st2 = jnp.dot(dl[1:2, :], wsty_ref[1], preferred_element_type=jnp.float32)
    st2 = st2 * style_wscale + bsty_ref[1:2, :] * b_mul              # (1, 2Cp)

    # ---- const + bias -> epilogue 1 -----------------------------------------
    x = epilogue(const_ref[...], noise_ref[0, 0], st1)               # (HW, Cp)

    # ---- EqualizedConv2d 3x3 'same': in-kernel im2col as 9 shifted matmuls --
    # Pixel p = W*h + w lives on sublanes; H == W == 4 for the input block, so
    # h = p >> 2 and w = p & 3.
    pix = lax.broadcasted_iota(jnp.int32, (HW, Cp), 0)
    hh = lax.shift_right_logical(pix, 2)         # p // W
    ww = jnp.bitwise_and(pix, 3)                 # p %  W

    acc = jnp.zeros((HW, Cp), jnp.float32)
    for t in range(9):
        ky, kx = t // 3, t % 3
        dy, dx = ky - 1, kx - 1
        if dy == 0 and dx == 0:
            xs = x
        else:
            s = dy * W + dx                      # flattened source offset
            xs = _rotate_rows(x, -s, HW)         # xs[p] = x[(p + s) % HW]
            valid = ((hh + dy >= 0) & (hh + dy < H) &
                     (ww + dx >= 0) & (ww + dx < W))
            xs = jnp.where(valid, xs, 0.0)       # zero-pad the 'same' border
        acc = acc + jnp.dot(xs, wconv_ref[t], preferred_element_type=jnp.float32)
    x = acc * conv_wmul + bconv_ref[...] * b_mul

    # ---- epilogue 2 ----------------------------------------------------------
    x = epilogue(x, noise_ref[0, 1], st2)
    o_ref[0] = x.astype(o_ref.dtype)


# ----------------------------------------------------------------------------
# Wrapper: layout packing (tiny one-time XLA glue) + single pallas_call
# ----------------------------------------------------------------------------
def input_block_forward(params, dlatents, noise1, noise2):
    """dlatents: (B, 2, D); noise*: (B, 1, 4, 4) -> (B, nf, 4, 4)."""
    # TODO(synk): only the default const_input_layer=True / instance-norm path
    # is implemented (dense-input and pixel-norm variants omitted).
    B = dlatents.shape[0]
    C = params["nf"]
    D = dlatents.shape[-1]
    H = W = 4
    HW = H * W
    assert H == 4 and W == 4, "InputBlock operates on a fixed 4x4 spatial grid"
    Cp = _round_up(C, 128)
    Dp = _round_up(D, 128)
    f32 = jnp.float32

    # const + bias in channels-on-lanes (HW, Cp) layout.
    const_b = params["const"].reshape(C, HW).T.astype(f32) + params["const_bias"][None, :]
    const_b = jnp.pad(const_b, ((0, 0), (0, Cp - C)))                      # (HW, Cp)

    # dlatents, padded on the contraction dim (padded entries are zero).
    dl = jnp.pad(dlatents.astype(f32), ((0, 0), (0, 0), (0, Dp - D)))      # (B, 2, Dp)

    # StyleMod equalized-linear weights packed as (Dp, 2*Cp): cols [0,Cp) = ys,
    # cols [Cp,2Cp) = yb; padded rows/cols are zero.
    def pack_style_w(w):                                                   # (2C, D)
        ws = jnp.pad(w[:C].T.astype(f32), ((0, Dp - D), (0, Cp - C)))
        wb = jnp.pad(w[C:].T.astype(f32), ((0, Dp - D), (0, Cp - C)))
        return jnp.concatenate([ws, wb], axis=1)                          # (Dp, 2Cp)

    def pack_style_b(b):                                                   # (2C,)
        return jnp.concatenate([jnp.pad(b[:C].astype(f32), (0, Cp - C)),
                                jnp.pad(b[C:].astype(f32), (0, Cp - C))])  # (2Cp,)

    w_style = jnp.stack([pack_style_w(params["epi1_style_w"]),
                         pack_style_w(params["epi2_style_w"])])            # (2, Dp, 2Cp)
    b_style = jnp.stack([pack_style_b(params["epi1_style_b"]),
                         pack_style_b(params["epi2_style_b"])])            # (2, 2Cp)

    # Noise * per-channel weight, precomputed (avoids a lane-of-1 block +
    # in-kernel cross-lane broadcast).
    nw1 = jnp.pad(params["epi1_noise_w"].astype(f32), (0, Cp - C))
    nw2 = jnp.pad(params["epi2_noise_w"].astype(f32), (0, Cp - C))
    noise_nw = jnp.stack(
        [noise1.astype(f32).reshape(B, HW, 1) * nw1[None, None, :],
         noise2.astype(f32).reshape(B, HW, 1) * nw2[None, None, :]],
        axis=1)                                                            # (B, 2, HW, Cp)

    # Conv weights as 9 (Cin, Cout) taps, tap index t = ky*3 + kx.
    w_conv = params["conv_w"].astype(f32).transpose(2, 3, 1, 0).reshape(9, C, C)
    w_conv = jnp.pad(w_conv, ((0, 0), (0, Cp - C), (0, Cp - C)))           # (9, Cp, Cp)
    b_conv = jnp.pad(params["conv_b"].astype(f32), (0, Cp - C)).reshape(1, Cp)

    kernel = functools.partial(
        _input_block_kernel, H=H, W=W,
        style_wscale=float(params["style_wscale"]),
        conv_wmul=float(params["conv_wmul"]),
        b_mul=float(params["b_mul"]),
        eps=1e-5, neg_slope=0.2)

    out = pl.pallas_call(
        kernel,
        out_shape=jax.ShapeDtypeStruct((B, HW, Cp), jnp.float32),
        grid_spec=pltpu.PrefetchScalarGridSpec(
            num_scalar_prefetch=0,
            grid=(B,),
            in_specs=[
                pl.BlockSpec((HW, Cp), lambda b: (0, 0)),              # const+bias
                pl.BlockSpec((1, 2, Dp), lambda b: (b, 0, 0)),         # dlatents[b]
                pl.BlockSpec((2, Dp, 2 * Cp), lambda b: (0, 0, 0)),    # style weights
                pl.BlockSpec((2, 2 * Cp), lambda b: (0, 0)),           # style biases
                pl.BlockSpec((1, 2, HW, Cp), lambda b: (b, 0, 0, 0)),  # noise * nw
                pl.BlockSpec((9, Cp, Cp), lambda b: (0, 0, 0)),        # conv taps
                pl.BlockSpec((1, Cp), lambda b: (0, 0)),               # conv bias
            ],
            out_specs=pl.BlockSpec((1, HW, Cp), lambda b: (b, 0, 0)),
        ),
        compiler_params=pltpu.CompilerParams(
            dimension_semantics=("parallel",),
        ),
    )(const_b, dl, w_style, b_style, noise_nw, w_conv, b_conv)

    # Single layout op back to NCHW (lane-dense Cp=128 kernel output).
    return out[:, :, :C].transpose(0, 2, 1).reshape(B, C, H, W)


# ----------------------------------------------------------------------------
# InputBlock parameters (const_input_layer=True, default flags)
# ----------------------------------------------------------------------------
def init_input_block_params(key, nf=32, dlatent_dim=32, gain=float(np.sqrt(2)), lrmul=1.0):
    ks = jax.random.split(key, 10)
    style_he_std = 1.0 * dlatent_dim ** (-0.5)       # StyleMod linear: gain=1.0, use_wscale
    conv_he_std = gain * (nf * 3 * 3) ** (-0.5)      # conv: gain=sqrt(2), use_wscale
    # NOTE: torch inits const to ones and biases / noise-weights to zeros; random
    # values are used here so the numerical check is non-trivial.
    return dict(
        nf=nf,
        const=jax.random.normal(ks[0], (1, nf, 4, 4), jnp.float32),
        const_bias=0.1 * jax.random.normal(ks[1], (nf,), jnp.float32),
        epi1_noise_w=0.1 * jax.random.normal(ks[2], (nf,), jnp.float32),
        epi1_style_w=jax.random.normal(ks[3], (2 * nf, dlatent_dim), jnp.float32),
        epi1_style_b=0.1 * jax.random.normal(ks[4], (2 * nf,), jnp.float32),
        conv_w=jax.random.normal(ks[5], (nf, nf, 3, 3), jnp.float32),
        conv_b=0.1 * jax.random.normal(ks[6], (nf,), jnp.float32),
        epi2_noise_w=0.1 * jax.random.normal(ks[7], (nf,), jnp.float32),
        epi2_style_w=jax.random.normal(ks[8], (2 * nf, dlatent_dim), jnp.float32),
        epi2_style_b=0.1 * jax.random.normal(ks[9], (2 * nf,), jnp.float32),
        style_wscale=float(style_he_std * lrmul),
        conv_wmul=float(conv_he_std * lrmul),
        b_mul=float(lrmul),
    )


# ----------------------------------------------------------------------------
# Pure-JAX reference (mirrors the PyTorch forward exactly)
# ----------------------------------------------------------------------------
def _ref_epilogue(x, noise, noise_w, style, eps=1e-5):
    x = x + noise_w[None, :, None, None] * noise
    x = jnp.where(x >= 0, x, 0.2 * x)
    mean = jnp.mean(x, axis=(2, 3), keepdims=True)
    var = jnp.mean((x - mean) ** 2, axis=(2, 3), keepdims=True)
    x = (x - mean) / jnp.sqrt(var + eps)
    st = style.reshape(x.shape[0], 2, x.shape[1], 1, 1)
    return x * (st[:, 0] + 1.0) + st[:, 1]


def input_block_reference(params, dlatents, noise1, noise2):
    B = dlatents.shape[0]
    nf = params["nf"]
    hp = lax.Precision.HIGHEST
    x = (jnp.broadcast_to(params["const"], (B, nf, 4, 4))
         + params["const_bias"][None, :, None, None])
    s1 = (jnp.dot(dlatents[:, 0], (params["epi1_style_w"] * params["style_wscale"]).T,
                  precision=hp) + params["epi1_style_b"] * params["b_mul"])
    x = _ref_epilogue(x, noise1, params["epi1_noise_w"], s1)
    x = lax.conv_general_dilated(x, params["conv_w"] * params["conv_wmul"],
                                 window_strides=(1, 1), padding=((1, 1), (1, 1)),
                                 dimension_numbers=("NCHW", "OIHW", "NCHW"),
                                 precision=hp)
    x = x + (params["conv_b"] * params["b_mul"])[None, :, None, None]
    s2 = (jnp.dot(dlatents[:, 1], (params["epi2_style_w"] * params["style_wscale"]).T,
                  precision=hp) + params["epi2_style_b"] * params["b_mul"])
    x = _ref_epilogue(x, noise2, params["epi2_noise_w"], s2)
    return x


# ----------------------------------------------------------------------------
if __name__ == "__main__":
    key = jax.random.PRNGKey(0)
    k_p, k_d, k_n1, k_n2 = jax.random.split(key, 4)

    batch, nf, dlatent_dim = 2, 32, 32
    params = init_input_block_params(k_p, nf=nf, dlatent_dim=dlatent_dim)

    dlatents = jax.random.normal(k_d, (batch, 2, dlatent_dim), jnp.float32)
    # NoiseLayer draws torch.randn(B,1,H,W) at call time; generated here deterministically.
    noise1 = jax.random.normal(k_n1, (batch, 1, 4, 4), jnp.float32)
    noise2 = jax.random.normal(k_n2, (batch, 1, 4, 4), jnp.float32)

    fwd = jax.jit(lambda d, n1, n2: input_block_forward(params, d, n1, n2))
    out = jax.block_until_ready(fwd(dlatents, noise1, noise2))

    ref = input_block_reference(params, dlatents, noise1, noise2)
    assert out.shape == (batch, nf, 4, 4)
    # All kernel matmuls are f32 on the MXU (typically ~1e-5 agreement); modest
    # margin kept for cross-generation matmul-pass differences.
    assert bool(jnp.allclose(out, ref, atol=1e-2, rtol=1e-2)), "mismatch vs reference"

    print("KERNEL_OK")
</pallas_src>

<mosaic_0001>
module attributes {stable_mosaic.version = 11 : i64} {
  func.func @_input_block_kernel(%arg0: i32, %arg1: memref<16x128xf32, #tpu.memory_space<vmem>>, %arg2: memref<1x2x128xf32, #tpu.memory_space<vmem>>, %arg3: memref<2x128x256xf32, #tpu.memory_space<vmem>>, %arg4: memref<2x256xf32, #tpu.memory_space<vmem>>, %arg5: memref<1x2x16x128xf32, #tpu.memory_space<vmem>>, %arg6: memref<9x128x128xf32, #tpu.memory_space<vmem>>, %arg7: memref<1x128xf32, #tpu.memory_space<vmem>>, %arg8: memref<1x16x128xf32, #tpu.memory_space<vmem>>) attributes {dimension_semantics = [#tpu.dimension_semantics<parallel>], iteration_bounds = array<i64: 2>, scalar_prefetch = 0 : i64, scratch_operands = 0 : i64, tpu.core_type = #tpu.core_type<tc>, window_params = [{pipeline_mode = #tpu.pipeline_mode<synchronous>, transform_indices = @transform_0, window_bounds = array<i64: 16, 128>}, {transform_indices = @transform_1, window_bounds = array<i64: 1, 2, 128>}, {pipeline_mode = #tpu.pipeline_mode<synchronous>, transform_indices = @transform_2, window_bounds = array<i64: 2, 128, 256>}, {pipeline_mode = #tpu.pipeline_mode<synchronous>, transform_indices = @transform_3, window_bounds = array<i64: 2, 256>}, {transform_indices = @transform_4, window_bounds = array<i64: 1, 2, 16, 128>}, {pipeline_mode = #tpu.pipeline_mode<synchronous>, transform_indices = @transform_5, window_bounds = array<i64: 9, 128, 128>}, {pipeline_mode = #tpu.pipeline_mode<synchronous>, transform_indices = @transform_6, window_bounds = array<i64: 1, 128>}, {transform_indices = @transform_7, window_bounds = array<i64: 1, 16, 128>}]} {
    %c0 = arith.constant 0 : index
    %c0_0 = arith.constant 0 : index
    %c0_1 = arith.constant 0 : index
    %0 = vector.load %arg2[%c0, %c0_0, %c0_1] : memref<1x2x128xf32, #tpu.memory_space<vmem>>, vector<1x2x128xf32>
    %1 = vector.shape_cast %0 : vector<1x2x128xf32> to vector<2x128xf32>
    %2 = vector.extract_strided_slice %1 {offsets = [0, 0], sizes = [1, 128], strides = [1, 1]} : vector<2x128xf32> to vector<1x128xf32>
    %c0_2 = arith.constant 0 : index
    %c0_3 = arith.constant 0 : index
    %c0_4 = arith.constant 0 : index
    %3 = vector.load %arg3[%c0_2, %c0_3, %c0_4] : memref<2x128x256xf32, #tpu.memory_space<vmem>>, vector<1x128x256xf32>
    %4 = vector.shape_cast %3 : vector<1x128x256xf32> to vector<128x256xf32>
    %cst = arith.constant dense<0.000000e+00> : vector<1x256xf32>
    %5 = tpu.matmul %2, %4, %cst {dimension_numbers = #tpu.dot_dimension_numbers<[1], [0], [0], [1], [0, 0, 1, 1], [], []>} : vector<1x128xf32>, vector<128x256xf32>, vector<1x256xf32> -> vector<1x256xf32>
    %cst_5 = arith.constant 0.176776692 : f32
    %6 = vector.broadcast %cst_5 : f32 to vector<1x256xf32>
    %7 = arith.mulf %5, %6 : vector<1x256xf32>
    %c0_6 = arith.constant 0 : index
    %c0_7 = arith.constant 0 : index
    %8 = vector.load %arg4[%c0_6, %c0_7] : memref<2x256xf32, #tpu.memory_space<vmem>>, vector<1x256xf32>
    %cst_8 = arith.constant 1.000000e+00 : f32
    %9 = vector.broadcast %cst_8 : f32 to vector<1x256xf32>
    %10 = arith.mulf %8, %9 : vector<1x256xf32>
    %11 = arith.addf %7, %10 : vector<1x256xf32>
    %12 = vector.extract_strided_slice %1 {offsets = [1, 0], sizes = [1, 128], strides = [1, 1]} : vector<2x128xf32> to vector<1x128xf32>
    %c1 = arith.constant 1 : index
    %c0_9 = arith.constant 0 : index
    %c0_10 = arith.constant 0 : index
    %13 = vector.load %arg3[%c1, %c0_9, %c0_10] : memref<2x128x256xf32, #tpu.memory_space<vmem>>, vector<1x128x256xf32>
    %14 = vector.shape_cast %13 : vector<1x128x256xf32> to vector<128x256xf32>
    %cst_11 = arith.constant dense<0.000000e+00> : vector<1x256xf32>
    %15 = tpu.matmul %12, %14, %cst_11 {dimension_numbers = #tpu.dot_dimension_numbers<[1], [0], [0], [1], [0, 0, 1, 1], [], []>} : vector<1x128xf32>, vector<128x256xf32>, vector<1x256xf32> -> vector<1x256xf32>
    %cst_12 = arith.constant 0.176776692 : f32
    %16 = vector.broadcast %cst_12 : f32 to vector<1x256xf32>
    %17 = arith.mulf %15, %16 : vector<1x256xf32>
    %c1_13 = arith.constant 1 : index
    %c0_14 = arith.constant 0 : index
    %18 = vector.load %arg4[%c1_13, %c0_14] : memref<2x256xf32, #tpu.memory_space<vmem>>, vector<1x256xf32>
    %cst_15 = arith.constant 1.000000e+00 : f32
    %19 = vector.broadcast %cst_15 : f32 to vector<1x256xf32>
    %20 = arith.mulf %18, %19 : vector<1x256xf32>
    %21 = arith.addf %17, %20 : vector<1x256xf32>
    %c0_16 = arith.constant 0 : index
    %c0_17 = arith.constant 0 : index
    %22 = vector.load %arg1[%c0_16, %c0_17] : memref<16x128xf32, #tpu.memory_space<vmem>>, vector<16x128xf32>
    %c0_18 = arith.constant 0 : index
    %c0_19 = arith.constant 0 : index
    %c0_20 = arith.constant 0 : index
    %c0_21 = arith.constant 0 : index
    %23 = vector.load %arg5[%c0_18, %c0_19, %c0_20, %c0_21] : memref<1x2x16x128xf32, #tpu.memory_space<vmem>>, vector<1x1x16x128xf32>
    %24 = vector.shape_cast %23 : vector<1x1x16x128xf32> to vector<16x128xf32>
    %25 = arith.addf %22, %24 : vector<16x128xf32>
    %cst_22 = arith.constant 2.000000e-01 : f32
    %26 = vector.broadcast %cst_22 : f32 to vector<16x128xf32>
    %27 = arith.mulf %26, %25 : vector<16x128xf32>
    %28 = arith.maximumf %25, %27 : vector<16x128xf32>
    %cst_23 = arith.constant dense<0.000000e+00> : vector<128xf32>
    %29 = vector.multi_reduction <add>, %28, %cst_23 [0] : vector<16x128xf32> to vector<128xf32>
    %30 = vector.shape_cast %29 : vector<128xf32> to vector<1x128xf32>
    %cst_24 = arith.constant 1.600000e+01 : f32
    %31 = vector.broadcast %cst_24 : f32 to vector<1x128xf32>
    %32 = arith.divf %30, %31 : vector<1x128xf32>
    %33 = vector.broadcast %32 : vector<1x128xf32> to vector<16x128xf32>
    %34 = arith.subf %28, %33 : vector<16x128xf32>
    %35 = arith.mulf %34, %34 : vector<16x128xf32>
    %cst_25 = arith.constant dense<0.000000e+00> : vector<128xf32>
    %36 = vector.multi_reduction <add>, %35, %cst_25 [0] : vector<16x128xf32> to vector<128xf32>
    %37 = vector.shape_cast %36 : vector<128xf32> to vector<1x128xf32>
    %cst_26 = arith.constant 1.600000e+01 : f32
    %38 = vector.broadcast %cst_26 : f32 to vector<1x128xf32>
    %39 = arith.divf %37, %38 : vector<1x128xf32>
    %40 = vector.broadcast %32 : vector<1x128xf32> to vector<16x128xf32>
    %41 = arith.subf %28, %40 : vector<16x128xf32>
    %cst_27 = arith.constant 9.99999974E-6 : f32
    %42 = vector.broadcast %cst_27 : f32 to vector<1x128xf32>
    %43 = arith.addf %39, %42 : vector<1x128xf32>
    %44 = math.rsqrt %43 : vector<1x128xf32>
    %45 = vector.broadcast %44 : vector<1x128xf32> to vector<16x128xf32>
    %46 = arith.mulf %41, %45 : vector<16x128xf32>
    %47 = vector.extract_strided_slice %11 {offsets = [0, 0], sizes = [1, 128], strides = [1, 1]} : vector<1x256xf32> to vector<1x128xf32>
    %cst_28 = arith.constant 1.000000e+00 : f32
    %48 = vector.broadcast %cst_28 : f32 to vector<1x128xf32>
    %49 = arith.addf %47, %48 : vector<1x128xf32>
    %50 = vector.broadcast %49 : vector<1x128xf32> to vector<16x128xf32>
    %51 = arith.mulf %46, %50 : vector<16x128xf32>
    %52 = vector.extract_strided_slice %11 {offsets = [0, 128], sizes = [1, 128], strides = [1, 1]} : vector<1x256xf32> to vector<1x128xf32>
    %53 = vector.broadcast %52 : vector<1x128xf32> to vector<16x128xf32>
    %54 = arith.addf %51, %53 : vector<16x128xf32>
    %55 = tpu.iota {dimensions = array<i32: 0>} : vector<16x128xi32>
    %c2_i32 = arith.constant 2 : i32
    %56 = vector.broadcast %c2_i32 : i32 to vector<16x128xi32>
    %57 = arith.shrui %55, %56 : vector<16x128xi32>
    %c3_i32 = arith.constant 3 : i32
    %58 = vector.broadcast %c3_i32 : i32 to vector<16x128xi32>
    %59 = arith.andi %55, %58 : vector<16x128xi32>
    %cst_29 = arith.constant 0.000000e+00 : f32
    %60 = vector.broadcast %cst_29 : f32 to vector<16x128xf32>
    %61 = vector.extract_strided_slice %54 {offsets = [11, 0], sizes = [5, 128], strides = [1, 1]} : vector<16x128xf32> to vector<5x128xf32>
    %62 = vector.extract_strided_slice %54 {offsets = [0, 0], sizes = [11, 128], strides = [1, 1]} : vector<16x128xf32> to vector<11x128xf32>
    %63 = tpu.concatenate %61, %62 in 0 : vector<5x128xf32>, vector<11x128xf32> -> vector<16x128xf32>
    %c-1_i32 = arith.constant -1 : i32
    %64 = vector.broadcast %c-1_i32 : i32 to vector<16x128xi32>
    %65 = arith.addi %57, %64 : vector<16x128xi32>
    %c0_i32 = arith.constant 0 : i32
    %66 = vector.broadcast %c0_i32 : i32 to vector<16x128xi32>
    %67 = arith.cmpi sge, %65, %66 : vector<16x128xi32>
    %c-1_i32_30 = arith.constant -1 : i32
    %68 = vector.broadcast %c-1_i32_30 : i32 to vector<16x128xi32>
    %69 = arith.addi %57, %68 : vector<16x128xi32>
    %c4_i32 = arith.constant 4 : i32
    %70 = vector.broadcast %c4_i32 : i32 to vector<16x128xi32>
    %71 = arith.cmpi slt, %69, %70 : vector<16x128xi32>
    %72 = arith.andi %67, %71 : vector<16x128xi1>
    %c-1_i32_31 = arith.constant -1 : i32
    %73 = vector.broadcast %c-1_i32_31 : i32 to vector<16x128xi32>
    %74 = arith.addi %59, %73 : vector<16x128xi32>
    %c0_i32_32 = arith.constant 0 : i32
    %75 = vector.broadcast %c0_i32_32 : i32 to vector<16x128xi32>
    %76 = arith.cmpi sge, %74, %75 : vector<16x128xi32>
    %77 = arith.andi %72, %76 : vector<16x128xi1>
    %c-1_i32_33 = arith.constant -1 : i32
    %78 = vector.broadcast %c-1_i32_33 : i32 to vector<16x128xi32>
    %79 = arith.addi %59, %78 : vector<16x128xi32>
    %c4_i32_34 = arith.constant 4 : i32
    %80 = vector.broadcast %c4_i32_34 : i32 to vector<16x128xi32>
    %81 = arith.cmpi slt, %79, %80 : vector<16x128xi32>
    %82 = arith.andi %77, %81 : vector<16x128xi1>
    %cst_35 = arith.constant 0.000000e+00 : f32
    %83 = vector.broadcast %cst_35 : f32 to vector<16x128xf32>
    %84 = arith.select %82, %63, %83 : vector<16x128xi1>, vector<16x128xf32>
    %c0_36 = arith.constant 0 : index
    %c0_37 = arith.constant 0 : index
    %c0_38 = arith.constant 0 : index
    %85 = vector.load %arg6[%c0_36, %c0_37, %c0_38] : memref<9x128x128xf32, #tpu.memory_space<vmem>>, vector<1x128x128xf32>
    %86 = vector.shape_cast %85 : vector<1x128x128xf32> to vector<128x128xf32>
    %cst_39 = arith.constant dense<0.000000e+00> : vector<16x128xf32>
    %87 = tpu.matmul %84, %86, %cst_39 {dimension_numbers = #tpu.dot_dimension_numbers<[1], [0], [0], [1], [0, 0, 1, 1], [], []>} : vector<16x128xf32>, vector<128x128xf32>, vector<16x128xf32> -> vector<16x128xf32>
    %88 = arith.addf %60, %87 : vector<16x128xf32>
    %89 = vector.extract_strided_slice %54 {offsets = [12, 0], sizes = [4, 128], strides = [1, 1]} : vector<16x128xf32> to vector<4x128xf32>
    %90 = vector.extract_strided_slice %54 {offsets = [0, 0], sizes = [12, 128], strides = [1, 1]} : vector<16x128xf32> to vector<12x128xf32>
    %91 = tpu.concatenate %89, %90 in 0 : vector<4x128xf32>, vector<12x128xf32> -> vector<16x128xf32>
    %c-1_i32_40 = arith.constant -1 : i32
    %92 = vector.broadcast %c-1_i32_40 : i32 to vector<16x128xi32>
    %93 = arith.addi %57, %92 : vector<16x128xi32>
    %c0_i32_41 = arith.constant 0 : i32
    %94 = vector.broadcast %c0_i32_41 : i32 to vector<16x128xi32>
    %95 = arith.cmpi sge, %93, %94 : vector<16x128xi32>
    %c-1_i32_42 = arith.constant -1 : i32
    %96 = vector.broadcast %c-1_i32_42 : i32 to vector<16x128xi32>
    %97 = arith.addi %57, %96 : vector<16x128xi32>
    %c4_i32_43 = arith.constant 4 : i32
    %98 = vector.broadcast %c4_i32_43 : i32 to vector<16x128xi32>
    %99 = arith.cmpi slt, %97, %98 : vector<16x128xi32>
    %100 = arith.andi %95, %99 : vector<16x128xi1>
    %c0_i32_44 = arith.constant 0 : i32
    %101 = vector.broadcast %c0_i32_44 : i32 to vector<16x128xi32>
    %102 = arith.addi %59, %101 : vector<16x128xi32>
    %c0_i32_45 = arith.constant 0 : i32
    %103 = vector.broadcast %c0_i32_45 : i32 to vector<16x128xi32>
    %104 = arith.cmpi sge, %102, %103 : vector<16x128xi32>
    %105 = arith.andi %100, %104 : vector<16x128xi1>
    %c0_i32_46 = arith.constant 0 : i32
    %106 = vector.broadcast %c0_i32_46 : i32 to vector<16x128xi32>
    %107 = arith.addi %59, %106 : vector<16x128xi32>
    %c4_i32_47 = arith.constant 4 : i32
    %108 = vector.broadcast %c4_i32_47 : i32 to vector<16x128xi32>
    %109 = arith.cmpi slt, %107, %108 : vector<16x128xi32>
    %110 = arith.andi %105, %109 : vector<16x128xi1>
    %cst_48 = arith.constant 0.000000e+00 : f32
    %111 = vector.broadcast %cst_48 : f32 to vector<16x128xf32>
    %112 = arith.select %110, %91, %111 : vector<16x128xi1>, vector<16x128xf32>
    %c1_49 = arith.constant 1 : index
    %c0_50 = arith.constant 0 : index
    %c0_51 = arith.constant 0 : index
    %113 = vector.load %arg6[%c1_49, %c0_50, %c0_51] : memref<9x128x128xf32, #tpu.memory_space<vmem>>, vector<1x128x128xf32>
    %114 = vector.shape_cast %113 : vector<1x128x128xf32> to vector<128x128xf32>
    %cst_52 = arith.constant dense<0.000000e+00> : vector<16x128xf32>
    %115 = tpu.matmul %112, %114, %cst_52 {dimension_numbers = #tpu.dot_dimension_numbers<[1], [0], [0], [1], [0, 0, 1, 1], [], []>} : vector<16x128xf32>, vector<128x128xf32>, vector<16x128xf32> -> vector<16x128xf32>
    %116 = arith.addf %88, %115 : vector<16x128xf32>
    %117 = vector.extract_strided_slice %54 {offsets = [13, 0], sizes = [3, 128], strides = [1, 1]} : vector<16x128xf32> to vector<3x128xf32>
    %118 = vector.extract_strided_slice %54 {offsets = [0, 0], sizes = [13, 128], strides = [1, 1]} : vector<16x128xf32> to vector<13x128xf32>
    %119 = tpu.concatenate %117, %118 in 0 : vector<3x128xf32>, vector<13x128xf32> -> vector<16x128xf32>
    %c-1_i32_53 = arith.constant -1 : i32
    %120 = vector.broadcast %c-1_i32_53 : i32 to vector<16x128xi32>
    %121 = arith.addi %57, %120 : vector<16x128xi32>
    %c0_i32_54 = arith.constant 0 : i32
    %122 = vector.broadcast %c0_i32_54 : i32 to vector<16x128xi32>
    %123 = arith.cmpi sge, %121, %122 : vector<16x128xi32>
    %c-1_i32_55 = arith.constant -1 : i32
    %124 = vector.broadcast %c-1_i32_55 : i32 to vector<16x128xi32>
    %125 = arith.addi %57, %124 : vector<16x128xi32>
    %c4_i32_56 = arith.constant 4 : i32
    %126 = vector.broadcast %c4_i32_56 : i32 to vector<16x128xi32>
    %127 = arith.cmpi slt, %125, %126 : vector<16x128xi32>
    %128 = arith.andi %123, %127 : vector<16x128xi1>
    %c1_i32 = arith.constant 1 : i32
    %129 = vector.broadcast %c1_i32 : i32 to vector<16x128xi32>
    %130 = arith.addi %59, %129 : vector<16x128xi32>
    %c0_i32_57 = arith.constant 0 : i32
    %131 = vector.broadcast %c0_i32_57 : i32 to vector<16x128xi32>
    %132 = arith.cmpi sge, %130, %131 : vector<16x128xi32>
    %133 = arith.andi %128, %132 : vector<16x128xi1>
    %c1_i32_58 = arith.constant 1 : i32
    %134 = vector.broadcast %c1_i32_58 : i32 to vector<16x128xi32>
    %135 = arith.addi %59, %134 : vector<16x128xi32>
    %c4_i32_59 = arith.constant 4 : i32
    %136 = vector.broadcast %c4_i32_59 : i32 to vector<16x128xi32>
    %137 = arith.cmpi slt, %135, %136 : vector<16x128xi32>
    %138 = arith.andi %133, %137 : vector<16x128xi1>
    %cst_60 = arith.constant 0.000000e+00 : f32
    %139 = vector.broadcast %cst_60 : f32 to vector<16x128xf32>
    %140 = arith.select %138, %119, %139 : vector<16x128xi1>, vector<16x128xf32>
    %c2 = arith.constant 2 : index
    %c0_61 = arith.constant 0 : index
    %c0_62 = arith.constant 0 : index
    %141 = vector.load %arg6[%c2, %c0_61, %c0_62] : memref<9x128x128xf32, #tpu.memory_space<vmem>>, vector<1x128x128xf32>
    %142 = vector.shape_cast %141 : vector<1x128x128xf32> to vector<128x128xf32>
    %cst_63 = arith.constant dense<0.000000e+00> : vector<16x128xf32>
    %143 = tpu.matmul %140, %142, %cst_63 {dimension_numbers = #tpu.dot_dimension_numbers<[1], [0], [0], [1], [0, 0, 1, 1], [], []>} : vector<16x128xf32>, vector<128x128xf32>, vector<16x128xf32> -> vector<16x128xf32>
    %144 = arith.addf %116, %143 : vector<16x128xf32>
    %145 = vector.extract_strided_slice %54 {offsets = [15, 0], sizes = [1, 128], strides = [1, 1]} : vector<16x128xf32> to vector<1x128xf32>
    %146 = vector.extract_strided_slice %54 {offsets = [0, 0], sizes = [15, 128], strides = [1, 1]} : vector<16x128xf32> to vector<15x128xf32>
    %147 = tpu.concatenate %145, %146 in 0 : vector<1x128xf32>, vector<15x128xf32> -> vector<16x128xf32>
    %c0_i32_64 = arith.constant 0 : i32
    %148 = vector.broadcast %c0_i32_64 : i32 to vector<16x128xi32>
    %149 = arith.addi %57, %148 : vector<16x128xi32>
    %c0_i32_65 = arith.constant 0 : i32
    %150 = vector.broadcast %c0_i32_65 : i32 to vector<16x128xi32>
    %151 = arith.cmpi sge, %149, %150 : vector<16x128xi32>
    %c0_i32_66 = arith.constant 0 : i32
    %152 = vector.broadcast %c0_i32_66 : i32 to vector<16x128xi32>
    %153 = arith.addi %57, %152 : vector<16x128xi32>
    %c4_i32_67 = arith.constant 4 : i32
    %154 = vector.broadcast %c4_i32_67 : i32 to vector<16x128xi32>
    %155 = arith.cmpi slt, %153, %154 : vector<16x128xi32>
    %156 = arith.andi %151, %155 : vector<16x128xi1>
    %c-1_i32_68 = arith.constant -1 : i32
    %157 = vector.broadcast %c-1_i32_68 : i32 to vector<16x128xi32>
    %158 = arith.addi %59, %157 : vector<16x128xi32>
    %c0_i32_69 = arith.constant 0 : i32
    %159 = vector.broadcast %c0_i32_69 : i32 to vector<16x128xi32>
    %160 = arith.cmpi sge, %158, %159 : vector<16x128xi32>
    %161 = arith.andi %156, %160 : vector<16x128xi1>
    %c-1_i32_70 = arith.constant -1 : i32
    %162 = vector.broadcast %c-1_i32_70 : i32 to vector<16x128xi32>
    %163 = arith.addi %59, %162 : vector<16x128xi32>
    %c4_i32_71 = arith.constant 4 : i32
    %164 = vector.broadcast %c4_i32_71 : i32 to vector<16x128xi32>
    %165 = arith.cmpi slt, %163, %164 : vector<16x128xi32>
    %166 = arith.andi %161, %165 : vector<16x128xi1>
    %cst_72 = arith.constant 0.000000e+00 : f32
    %167 = vector.broadcast %cst_72 : f32 to vector<16x128xf32>
    %168 = arith.select %166, %147, %167 : vector<16x128xi1>, vector<16x128xf32>
    %c3 = arith.constant 3 : index
    %c0_73 = arith.constant 0 : index
    %c0_74 = arith.constant 0 : index
    %169 = vector.load %arg6[%c3, %c0_73, %c0_74] : memref<9x128x128xf32, #tpu.memory_space<vmem>>, vector<1x128x128xf32>
    %170 = vector.shape_cast %169 : vector<1x128x128xf32> to vector<128x128xf32>
    %cst_75 = arith.constant dense<0.000000e+00> : vector<16x128xf32>
    %171 = tpu.matmul %168, %170, %cst_75 {dimension_numbers = #tpu.dot_dimension_numbers<[1], [0], [0], [1], [0, 0, 1, 1], [], []>} : vector<16x128xf32>, vector<128x128xf32>, vector<16x128xf32> -> vector<16x128xf32>
    %172 = arith.addf %144, %171 : vector<16x128xf32>
    %c4 = arith.constant 4 : index
    %c0_76 = arith.constant 0 : index
    %c0_77 = arith.constant 0 : index
    %173 = vector.load %arg6[%c4, %c0_76, %c0_77] : memref<9x128x128xf32, #tpu.memory_space<vmem>>, vector<1x128x128xf32>
    %174 = vector.shape_cast %173 : vector<1x128x128xf32> to vector<128x128xf32>
    %cst_78 = arith.constant dense<0.000000e+00> : vector<16x128xf32>
    %175 = tpu.matmul %54, %174, %cst_78 {dimension_numbers = #tpu.dot_dimension_numbers<[1], [0], [0], [1], [0, 0, 1, 1], [], []>} : vector<16x128xf32>, vector<128x128xf32>, vector<16x128xf32> -> vector<16x128xf32>
    %176 = arith.addf %172, %175 : vector<16x128xf32>
    %177 = vector.extract_strided_slice %54 {offsets = [1, 0], sizes = [15, 128], strides = [1, 1]} : vector<16x128xf32> to vector<15x128xf32>
    %178 = vector.extract_strided_slice %54 {offsets = [0, 0], sizes = [1, 128], strides = [1, 1]} : vector<16x128xf32> to vector<1x128xf32>
    %179 = tpu.concatenate %177, %178 in 0 : vector<15x128xf32>, vector<1x128xf32> -> vector<16x128xf32>
    %c0_i32_79 = arith.constant 0 : i32
    %180 = vector.broadcast %c0_i32_79 : i32 to vector<16x128xi32>
    %181 = arith.addi %57, %180 : vector<16x128xi32>
    %c0_i32_80 = arith.constant 0 : i32
    %182 = vector.broadcast %c0_i32_80 : i32 to vector<16x128xi32>
    %183 = arith.cmpi sge, %181, %182 : vector<16x128xi32>
    %c0_i32_81 = arith.constant 0 : i32
    %184 = vector.broadcast %c0_i32_81 : i32 to vector<16x128xi32>
    %185 = arith.addi %57, %184 : vector<16x128xi32>
    %c4_i32_82 = arith.constant 4 : i32
    %186 = vector.broadcast %c4_i32_82 : i32 to vector<16x128xi32>
    %187 = arith.cmpi slt, %185, %186 : vector<16x128xi32>
    %188 = arith.andi %183, %187 : vector<16x128xi1>
    %c1_i32_83 = arith.constant 1 : i32
    %189 = vector.broadcast %c1_i32_83 : i32 to vector<16x128xi32>
    %190 = arith.addi %59, %189 : vector<16x128xi32>
    %c0_i32_84 = arith.constant 0 : i32
    %191 = vector.broadcast %c0_i32_84 : i32 to vector<16x128xi32>
    %192 = arith.cmpi sge, %190, %191 : vector<16x128xi32>
    %193 = arith.andi %188, %192 : vector<16x128xi1>
    %c1_i32_85 = arith.constant 1 : i32
    %194 = vector.broadcast %c1_i32_85 : i32 to vector<16x128xi32>
    %195 = arith.addi %59, %194 : vector<16x128xi32>
    %c4_i32_86 = arith.constant 4 : i32
    %196 = vector.broadcast %c4_i32_86 : i32 to vector<16x128xi32>
    %197 = arith.cmpi slt, %195, %196 : vector<16x128xi32>
    %198 = arith.andi %193, %197 : vector<16x128xi1>
    %cst_87 = arith.constant 0.000000e+00 : f32
    %199 = vector.broadcast %cst_87 : f32 to vector<16x128xf32>
    %200 = arith.select %198, %179, %199 : vector<16x128xi1>, vector<16x128xf32>
    %c5 = arith.constant 5 : index
    %c0_88 = arith.constant 0 : index
    %c0_89 = arith.constant 0 : index
    %201 = vector.load %arg6[%c5, %c0_88, %c0_89] : memref<9x128x128xf32, #tpu.memory_space<vmem>>, vector<1x128x128xf32>
    %202 = vector.shape_cast %201 : vector<1x128x128xf32> to vector<128x128xf32>
    %cst_90 = arith.constant dense<0.000000e+00> : vector<16x128xf32>
    %203 = tpu.matmul %200, %202, %cst_90 {dimension_numbers = #tpu.dot_dimension_numbers<[1], [0], [0], [1], [0, 0, 1, 1], [], []>} : vector<16x128xf32>, vector<128x128xf32>, vector<16x128xf32> -> vector<16x128xf32>
    %204 = arith.addf %176, %203 : vector<16x128xf32>
    %205 = vector.extract_strided_slice %54 {offsets = [3, 0], sizes = [13, 128], strides = [1, 1]} : vector<16x128xf32> to vector<13x128xf32>
    %206 = vector.extract_strided_slice %54 {offsets = [0, 0], sizes = [3, 128], strides = [1, 1]} : vector<16x128xf32> to vector<3x128xf32>
    %207 = tpu.concatenate %205, %206 in 0 : vector<13x128xf32>, vector<3x128xf32> -> vector<16x128xf32>
    %c1_i32_91 = arith.constant 1 : i32
    %208 = vector.broadcast %c1_i32_91 : i32 to vector<16x128xi32>
    %209 = arith.addi %57, %208 : vector<16x128xi32>
    %c0_i32_92 = arith.constant 0 : i32
    %210 = vector.broadcast %c0_i32_92 : i32 to vector<16x128xi32>
    %211 = arith.cmpi sge, %209, %210 : vector<16x128xi32>
    %c1_i32_93 = arith.constant 1 : i32
    %212 = vector.broadcast %c1_i32_93 : i32 to vector<16x128xi32>
    %213 = arith.addi %57, %212 : vector<16x128xi32>
    %c4_i32_94 = arith.constant 4 : i32
    %214 = vector.broadcast %c4_i32_94 : i32 to vector<16x128xi32>
    %215 = arith.cmpi slt, %213, %214 : vector<16x128xi32>
    %216 = arith.andi %211, %215 : vector<16x128xi1>
    %c-1_i32_95 = arith.constant -1 : i32
    %217 = vector.broadcast %c-1_i32_95 : i32 to vector<16x128xi32>
    %218 = arith.addi %59, %217 : vector<16x128xi32>
    %c0_i32_96 = arith.constant 0 : i32
    %219 = vector.broadcast %c0_i32_96 : i32 to vector<16x128xi32>
    %220 = arith.cmpi sge, %218, %219 : vector<16x128xi32>
    %221 = arith.andi %216, %220 : vector<16x128xi1>
    %c-1_i32_97 = arith.constant -1 : i32
    %222 = vector.broadcast %c-1_i32_97 : i32 to vector<16x128xi32>
    %223 = arith.addi %59, %222 : vector<16x128xi32>
    %c4_i32_98 = arith.constant 4 : i32
    %224 = vector.broadcast %c4_i32_98 : i32 to vector<16x128xi32>
    %225 = arith.cmpi slt, %223, %224 : vector<16x128xi32>
    %226 = arith.andi %221, %225 : vector<16x128xi1>
    %cst_99 = arith.constant 0.000000e+00 : f32
    %227 = vector.broadcast %cst_99 : f32 to vector<16x128xf32>
    %228 = arith.select %226, %207, %227 : vector<16x128xi1>, vector<16x128xf32>
    %c6 = arith.constant 6 : index
    %c0_100 = arith.constant 0 : index
    %c0_101 = arith.constant 0 : index
    %229 = vector.load %arg6[%c6, %c0_100, %c0_101] : memref<9x128x128xf32, #tpu.memory_space<vmem>>, vector<1x128x128xf32>
    %230 = vector.shape_cast %229 : vector<1x128x128xf32> to vector<128x128xf32>
    %cst_102 = arith.constant dense<0.000000e+00> : vector<16x128xf32>
    %231 = tpu.matmul %228, %230, %cst_102 {dimension_numbers = #tpu.dot_dimension_numbers<[1], [0], [0], [1], [0, 0, 1, 1], [], []>} : vector<16x128xf32>, vector<128x128xf32>, vector<16x128xf32> -> vector<16x128xf32>
    %232 = arith.addf %204, %231 : vector<16x128xf32>
    %233 = vector.extract_strided_slice %54 {offsets = [4, 0], sizes = [12, 128], strides = [1, 1]} : vector<16x128xf32> to vector<12x128xf32>
    %234 = vector.extract_strided_slice %54 {offsets = [0, 0], sizes = [4, 128], strides = [1, 1]} : vector<16x128xf32> to vector<4x128xf32>
    %235 = tpu.concatenate %233, %234 in 0 : vector<12x128xf32>, vector<4x128xf32> -> vector<16x128xf32>
    %c1_i32_103 = arith.constant 1 : i32
    %236 = vector.broadcast %c1_i32_103 : i32 to vector<16x128xi32>
    %237 = arith.addi %57, %236 : vector<16x128xi32>
    %c0_i32_104 = arith.constant 0 : i32
    %238 = vector.broadcast %c0_i32_104 : i32 to vector<16x128xi32>
    %239 = arith.cmpi sge, %237, %238 : vector<16x128xi32>
    %c1_i32_105 = arith.constant 1 : i32
    %240 = vector.broadcast %c1_i32_105 : i32 to vector<16x128xi32>
    %241 = arith.addi %57, %240 : vector<16x128xi32>
    %c4_i32_106 = arith.constant 4 : i32
    %242 = vector.broadcast %c4_i32_106 : i32 to vector<16x128xi32>
    %243 = arith.cmpi slt, %241, %242 : vector<16x128xi32>
    %244 = arith.andi %239, %243 : vector<16x128xi1>
    %c0_i32_107 = arith.constant 0 : i32
    %245 = vector.broadcast %c0_i32_107 : i32 to vector<16x128xi32>
    %246 = arith.addi %59, %245 : vector<16x128xi32>
    %c0_i32_108 = arith.constant 0 : i32
    %247 = vector.broadcast %c0_i32_108 : i32 to vector<16x128xi32>
    %248 = arith.cmpi sge, %246, %247 : vector<16x128xi32>
    %249 = arith.andi %244, %248 : vector<16x128xi1>
    %c0_i32_109 = arith.constant 0 : i32
    %250 = vector.broadcast %c0_i32_109 : i32 to vector<16x128xi32>
    %251 = arith.addi %59, %250 : vector<16x128xi32>
    %c4_i32_110 = arith.constant 4 : i32
    %252 = vector.broadcast %c4_i32_110 : i32 to vector<16x128xi32>
    %253 = arith.cmpi slt, %251, %252 : vector<16x128xi32>
    %254 = arith.andi %249, %253 : vector<16x128xi1>
    %cst_111 = arith.constant 0.000000e+00 : f32
    %255 = vector.broadcast %cst_111 : f32 to vector<16x128xf32>
    %256 = arith.select %254, %235, %255 : vector<16x128xi1>, vector<16x128xf32>
    %c7 = arith.constant 7 : index
    %c0_112 = arith.constant 0 : index
    %c0_113 = arith.constant 0 : index
    %257 = vector.load %arg6[%c7, %c0_112, %c0_113] : memref<9x128x128xf32, #tpu.memory_space<vmem>>, vector<1x128x128xf32>
    %258 = vector.shape_cast %257 : vector<1x128x128xf32> to vector<128x128xf32>
    %cst_114 = arith.constant dense<0.000000e+00> : vector<16x128xf32>
    %259 = tpu.matmul %256, %258, %cst_114 {dimension_numbers = #tpu.dot_dimension_numbers<[1], [0], [0], [1], [0, 0, 1, 1], [], []>} : vector<16x128xf32>, vector<128x128xf32>, vector<16x128xf32> -> vector<16x128xf32>
    %260 = arith.addf %232, %259 : vector<16x128xf32>
    %261 = vector.extract_strided_slice %54 {offsets = [5, 0], sizes = [11, 128], strides = [1, 1]} : vector<16x128xf32> to vector<11x128xf32>
    %262 = vector.extract_strided_slice %54 {offsets = [0, 0], sizes = [5, 128], strides = [1, 1]} : vector<16x128xf32> to vector<5x128xf32>
    %263 = tpu.concatenate %261, %262 in 0 : vector<11x128xf32>, vector<5x128xf32> -> vector<16x128xf32>
    %c1_i32_115 = arith.constant 1 : i32
    %264 = vector.broadcast %c1_i32_115 : i32 to vector<16x128xi32>
    %265 = arith.addi %57, %264 : vector<16x128xi32>
    %c0_i32_116 = arith.constant 0 : i32
    %266 = vector.broadcast %c0_i32_116 : i32 to vector<16x128xi32>
    %267 = arith.cmpi sge, %265, %266 : vector<16x128xi32>
    %c1_i32_117 = arith.constant 1 : i32
    %268 = vector.broadcast %c1_i32_117 : i32 to vector<16x128xi32>
    %269 = arith.addi %57, %268 : vector<16x128xi32>
    %c4_i32_118 = arith.constant 4 : i32
    %270 = vector.broadcast %c4_i32_118 : i32 to vector<16x128xi32>
    %271 = arith.cmpi slt, %269, %270 : vector<16x128xi32>
    %272 = arith.andi %267, %271 : vector<16x128xi1>
    %c1_i32_119 = arith.constant 1 : i32
    %273 = vector.broadcast %c1_i32_119 : i32 to vector<16x128xi32>
    %274 = arith.addi %59, %273 : vector<16x128xi32>
    %c0_i32_120 = arith.constant 0 : i32
    %275 = vector.broadcast %c0_i32_120 : i32 to vector<16x128xi32>
    %276 = arith.cmpi sge, %274, %275 : vector<16x128xi32>
    %277 = arith.andi %272, %276 : vector<16x128xi1>
    %c1_i32_121 = arith.constant 1 : i32
    %278 = vector.broadcast %c1_i32_121 : i32 to vector<16x128xi32>
    %279 = arith.addi %59, %278 : vector<16x128xi32>
    %c4_i32_122 = arith.constant 4 : i32
    %280 = vector.broadcast %c4_i32_122 : i32 to vector<16x128xi32>
    %281 = arith.cmpi slt, %279, %280 : vector<16x128xi32>
    %282 = arith.andi %277, %281 : vector<16x128xi1>
    %cst_123 = arith.constant 0.000000e+00 : f32
    %283 = vector.broadcast %cst_123 : f32 to vector<16x128xf32>
    %284 = arith.select %282, %263, %283 : vector<16x128xi1>, vector<16x128xf32>
    %c8 = arith.constant 8 : index
    %c0_124 = arith.constant 0 : index
    %c0_125 = arith.constant 0 : index
    %285 = vector.load %arg6[%c8, %c0_124, %c0_125] : memref<9x128x128xf32, #tpu.memory_space<vmem>>, vector<1x128x128xf32>
    %286 = vector.shape_cast %285 : vector<1x128x128xf32> to vector<128x128xf32>
    %cst_126 = arith.constant dense<0.000000e+00> : vector<16x128xf32>
    %287 = tpu.matmul %284, %286, %cst_126 {dimension_numbers = #tpu.dot_dimension_numbers<[1], [0], [0], [1], [0, 0, 1, 1], [], []>} : vector<16x128xf32>, vector<128x128xf32>, vector<16x128xf32> -> vector<16x128xf32>
    %288 = arith.addf %260, %287 : vector<16x128xf32>
    %cst_127 = arith.constant 0.0833333358 : f32
    %289 = vector.broadcast %cst_127 : f32 to vector<16x128xf32>
    %290 = arith.mulf %288, %289 : vector<16x128xf32>
    %c0_128 = arith.constant 0 : index
    %c0_129 = arith.constant 0 : index
    %291 = vector.load %arg7[%c0_128, %c0_129] : memref<1x128xf32, #tpu.memory_space<vmem>>, vector<1x128xf32>
    %cst_130 = arith.constant 1.000000e+00 : f32
    %292 = vector.broadcast %cst_130 : f32 to vector<1x128xf32>
    %293 = arith.mulf %291, %292 : vector<1x128xf32>
    %294 = vector.broadcast %293 : vector<1x128xf32> to vector<16x128xf32>
    %295 = arith.addf %290, %294 : vector<16x128xf32>
    %c0_131 = arith.constant 0 : index
    %c1_132 = arith.constant 1 : index
    %c0_133 = arith.constant 0 : index
    %c0_134 = arith.constant 0 : index
    %296 = vector.load %arg5[%c0_131, %c1_132, %c0_133, %c0_134] : memref<1x2x16x128xf32, #tpu.memory_space<vmem>>, vector<1x1x16x128xf32>
    %297 = vector.shape_cast %296 : vector<1x1x16x128xf32> to vector<16x128xf32>
    %298 = arith.addf %295, %297 : vector<16x128xf32>
    %cst_135 = arith.constant 2.000000e-01 : f32
    %299 = vector.broadcast %cst_135 : f32 to vector<16x128xf32>
    %300 = arith.mulf %299, %298 : vector<16x128xf32>
    %301 = arith.maximumf %298, %300 : vector<16x128xf32>
    %cst_136 = arith.constant dense<0.000000e+00> : vector<128xf32>
    %302 = vector.multi_reduction <add>, %301, %cst_136 [0] : vector<16x128xf32> to vector<128xf32>
    %303 = vector.shape_cast %302 : vector<128xf32> to vector<1x128xf32>
    %cst_137 = arith.constant 1.600000e+01 : f32
    %304 = vector.broadcast %cst_137 : f32 to vector<1x128xf32>
    %305 = arith.divf %303, %304 : vector<1x128xf32>
    %306 = vector.broadcast %305 : vector<1x128xf32> to vector<16x128xf32>
    %307 = arith.subf %301, %306 : vector<16x128xf32>
    %308 = arith.mulf %307, %307 : vector<16x128xf32>
    %cst_138 = arith.constant dense<0.000000e+00> : vector<128xf32>
    %309 = vector.multi_reduction <add>, %308, %cst_138 [0] : vector<16x128xf32> to vector<128xf32>
    %310 = vector.shape_cast %309 : vector<128xf32> to vector<1x128xf32>
    %cst_139 = arith.constant 1.600000e+01 : f32
    %311 = vector.broadcast %cst_139 : f32 to vector<1x128xf32>
    %312 = arith.divf %310, %311 : vector<1x128xf32>
    %313 = vector.broadcast %305 : vector<1x128xf32> to vector<16x128xf32>
    %314 = arith.subf %301, %313 : vector<16x128xf32>
    %cst_140 = arith.constant 9.99999974E-6 : f32
    %315 = vector.broadcast %cst_140 : f32 to vector<1x128xf32>
    %316 = arith.addf %312, %315 : vector<1x128xf32>
    %317 = math.rsqrt %316 : vector<1x128xf32>
    %318 = vector.broadcast %317 : vector<1x128xf32> to vector<16x128xf32>
    %319 = arith.mulf %314, %318 : vector<16x128xf32>
    %320 = vector.extract_strided_slice %21 {offsets = [0, 0], sizes = [1, 128], strides = [1, 1]} : vector<1x256xf32> to vector<1x128xf32>
    %cst_141 = arith.constant 1.000000e+00 : f32
    %321 = vector.broadcast %cst_141 : f32 to vector<1x128xf32>
    %322 = arith.addf %320, %321 : vector<1x128xf32>
    %323 = vector.broadcast %322 : vector<1x128xf32> to vector<16x128xf32>
    %324 = arith.mulf %319, %323 : vector<16x128xf32>
    %325 = vector.extract_strided_slice %21 {offsets = [0, 128], sizes = [1, 128], strides = [1, 1]} : vector<1x256xf32> to vector<1x128xf32>
    %326 = vector.broadcast %325 : vector<1x128xf32> to vector<16x128xf32>
    %327 = arith.addf %324, %326 : vector<16x128xf32>
    %c0_142 = arith.constant 0 : index
    %c0_143 = arith.constant 0 : index
    %c0_144 = arith.constant 0 : index
    %328 = vector.load %arg8[%c0_142, %c0_143, %c0_144] : memref<1x16x128xf32, #tpu.memory_space<vmem>>, vector<1x16x128xf32>
    %329 = vector.shape_cast %328 : vector<1x16x128xf32> to vector<16x128xf32>
    %330 = vector.shape_cast %327 : vector<16x128xf32> to vector<1x16x128xf32>
    tpu.vector_store %arg8[%c0_142, %c0_143, %c0_144], %330 {strides = array<i32>} : memref<1x16x128xf32, #tpu.memory_space<vmem>>, vector<1x16x128xf32>,
    return
  }
  func.func @transform_0(%arg0: i32) -> (i32, i32) {
    %c0_i32 = arith.constant 0 : i32
    %c0_i32_0 = arith.constant 0 : i32
    %c0_i32_1 = arith.constant 0 : i32
    return %c0_i32, %c0_i32_0 : i32, i32
  }
  func.func @transform_1(%arg0: i32) -> (i32, i32, i32) {
    %c0_i32 = arith.constant 0 : i32
    %c0_i32_0 = arith.constant 0 : i32
    %c0_i32_1 = arith.constant 0 : i32
    return %arg0, %c0_i32, %c0_i32_0 : i32, i32, i32
  }
  func.func @transform_2(%arg0: i32) -> (i32, i32, i32) {
    %c0_i32 = arith.constant 0 : i32
    %c0_i32_0 = arith.constant 0 : i32
    %c0_i32_1 = arith.constant 0 : i32
    %c0_i32_2 = arith.constant 0 : i32
    return %c0_i32, %c0_i32_0, %c0_i32_1 : i32, i32, i32
  }
  func.func @transform_3(%arg0: i32) -> (i32, i32) {
    %c0_i32 = arith.constant 0 : i32
    %c0_i32_0 = arith.constant 0 : i32
    %c0_i32_1 = arith.constant 0 : i32
    return %c0_i32, %c0_i32_0 : i32, i32
  }
  func.func @transform_4(%arg0: i32) -> (i32, i32, i32, i32) {
    %c0_i32 = arith.constant 0 : i32
    %c0_i32_0 = arith.constant 0 : i32
    %c0_i32_1 = arith.constant 0 : i32
    %c0_i32_2 = arith.constant 0 : i32
    return %arg0, %c0_i32, %c0_i32_0, %c0_i32_1 : i32, i32, i32, i32
  }
  func.func @transform_5(%arg0: i32) -> (i32, i32, i32) {
    %c0_i32 = arith.constant 0 : i32
    %c0_i32_0 = arith.constant 0 : i32
    %c0_i32_1 = arith.constant 0 : i32
    %c0_i32_2 = arith.constant 0 : i32
    return %c0_i32, %c0_i32_0, %c0_i32_1 : i32, i32, i32
  }
  func.func @transform_6(%arg0: i32) -> (i32, i32) {
    %c0_i32 = arith.constant 0 : i32
    %c0_i32_0 = arith.constant 0 : i32
    %c0_i32_1 = arith.constant 0 : i32
    return %c0_i32, %c0_i32_0 : i32, i32
  }
  func.func @transform_7(%arg0: i32) -> (i32, i32, i32) {
    %c0_i32 = arith.constant 0 : i32
    %c0_i32_0 = arith.constant 0 : i32
    %c0_i32_1 = arith.constant 0 : i32
    return %arg0, %c0_i32, %c0_i32_0 : i32, i32, i32
  }
}

</mosaic_0001>

<bundles_post_ra>
// kernel: mul.22
= control target key start
LH: loop header
LB: loop body
LE: loop exit
PB: predicated region body
PF: predicated region fallthrough
CT: control target
= control target key end

     0   :  { %2 = vsyncpa [#allocation1], 0  ;;  %s84_s8 = smov [#allocation0]   ;;  %s104_s0 = inlined_call_operand.hbm [shape: f32[2,1,4,4], index: 0, kind: input, shape index: {}]   ;;  %s105_s1 = inlined_call_operand.vmem [shape: f32[2,16], index: 1, kind: output, shape index: {}]  }
   0x1   :  { %s6_s0 = sshll.u32 %s104_s0, 4  ;;  %s8_s9 = sshll.u32 %s84_s8, 4  ;;  %s7_s0 = int_to_ptr.hbm [resolvable:$true] %s6_s0  ;;  %s9_s9 = int_to_ptr.vmem [resolvable:$true] %s8_s9 }
   0x2   :  { %11 = dma.hbm_to_vmem [thread:$0]  %s7_s0, 128, %s9_s9, [#allocation1]  }
   0x3   :  { %82 = dma.done.wait [#allocation1], 128  }
   0x4   :  { %83 = vsyncadd [#allocation1], 4294967168  ;;  %v17_v0 = vld [vmem:[#allocation0 + $0x4] sm:$0xf]  ;;  %v20_v1 = vld [vmem:[#allocation0] sm:$0xf] }
   0x5   :  { %19 = vst [vmem:[#allocation3 + $0x8] sm:$0xf] %v17_v0  ;;  %s27_s10 = smov 3  ;;  %s41_s11 = smov 3  ;;  %vm24_vm0 = vcmask 31744   ;;  %vm31_vm1 = vcmask 130144  }
   0x6   :  { %21 = vst [vmem:[#allocation3] sm:$0xf] %v20_v1  ;;  %s85_s12 = smov 12   ;;  %s86_s13 = smov 4   ;;  %vm38_vm2 = vcmask 97344   ;;  %vm45_vm3 = vcmask 64544  }
   0x7   :  { %s34_s14 = smov 3  ;;  %s87_s15 = smov 8  }
   0x8   :  { %s22_s16 = smov 3 }
   0xd   :  { %v28_v2 = vld [vmem:[#allocation3 + $0x3] ss:$8 sm:%s27_s10]   ;;  %v42_v3 = vld [vmem:[#allocation3 + $0x1] ss:$8 sm:%s41_s11]   ;;  %v35_v4 = vld [vmem:[#allocation3 + $0x2] ss:$8 sm:%s34_s14]  }
   0xe   :  { %29 = vrot.lane.b32.xlu0 %v28_v2, %s85_s12  ;;  %43 = vrot.lane.b32.xlu1 %v42_v3, %s86_s13  ;;  %v23_v5 = vld [vmem:[#allocation3] ss:$8 sm:%s22_s16]  }
   0xf   :  { %25 = vst.msk [vmem:[#allocation2] sm:$0x3] %vm24_vm0, %v23_v5  }
  0x16   :  { %36 = vrot.lane.b32.xlu0 %v35_v4, %s87_s15 }
  0x80   :  { %v30_v6 = vpop.permute.xlu0 %29   ;;  %v44_v7 = vpop.permute.xlu1 %43  }
  0x81   :  { %32 = vst.msk [vmem:[#allocation2] sm:$0x3] %vm31_vm1, %v30_v6  }
  0x88   :  { %v37_v8 = vpop.permute.xlu0 %36  }
  0x89   :  { %39 = vst.msk [vmem:[#allocation2] sm:$0x3] %vm38_vm2, %v37_v8  }
  0x8a   :  { %46 = vst.msk [vmem:[#allocation2] sm:$0x3] %vm45_vm3, %v44_v7  }
  0x91   :  { %v49_v9 = vld [vmem:[#allocation2] sm:$0x3] }
  0x92   :  { %52 = vst [vmem:[%s105_s1] sm:$0x3] %v49_v9 }
  0x93   :  { %53 = vsyncpa [#allocation1], 1 }

// kernel: mul.15
= control target key start
LH: loop header
LB: loop body
LE: loop exit
PB: predicated region body
PF: predicated region fallthrough
CT: control target
= control target key end

     0   :  { %s29_s10 = smov 3  ;;  %s45_s11 = smov 12   ;;  %vm12_vm0 = vcmask 31744   ;;  %vm19_vm1 = vcmask 130144   ;;  %vm26_vm2 = vcmask 97344   ;;  %vm33_vm3 = vcmask 64544   ;;  %s67_s0 = inlined_call_operand.vmem [shape: f32[2,1,4,4], index: 0, kind: input, shape index: {}]   ;;  %s68_s1 = inlined_call_operand.vmem [shape: f32[2,16], index: 1, kind: output, shape index: {}]  }
   0x1   :  { %v41_v0 = vld [vmem:[%s67_s0 + $0x4] sm:$0xf]  ;;  %v8_v1 = vld [vmem:[%s67_s0] sm:$0xf]  ;;  %s15_s0 = smov 3  ;;  %s46_s12 = smov 4  }
   0x2   :  { %7 = vst [vmem:[#allocation1 + $0x8] sm:$0xf] %v41_v0  ;;  %s22_s13 = smov 3  ;;  %s47_s14 = smov 8  }
   0x3   :  { %9 = vst [vmem:[#allocation1] sm:$0xf] %v8_v1  ;;  %s10_s15 = smov 3 }
   0xa   :  { %v16_v2 = vld [vmem:[#allocation1 + $0x3] ss:$8 sm:%s15_s0]   ;;  %v30_v3 = vld [vmem:[#allocation1 + $0x1] ss:$8 sm:%s29_s10]   ;;  %v23_v4 = vld [vmem:[#allocation1 + $0x2] ss:$8 sm:%s22_s13]  }
   0xb   :  { %17 = vrot.lane.b32.xlu0 %v16_v2, %s45_s11  ;;  %31 = vrot.lane.b32.xlu1 %v30_v3, %s46_s12  ;;  %v11_v5 = vld [vmem:[#allocation1] ss:$8 sm:%s10_s15]  }
   0xc   :  { %13 = vst.msk [vmem:[#allocation0] sm:$0x3] %vm12_vm0, %v11_v5  }
  0x13   :  { %24 = vrot.lane.b32.xlu0 %v23_v4, %s47_s14 }
  0x7d   :  { %v18_v6 = vpop.permute.xlu0 %17   ;;  %v32_v7 = vpop.permute.xlu1 %31  }
  0x7e   :  { %20 = vst.msk [vmem:[#allocation0] sm:$0x3] %vm19_vm1, %v18_v6  }
  0x85   :  { %v25_v8 = vpop.permute.xlu0 %24  }
  0x86   :  { %27 = vst.msk [vmem:[#allocation0] sm:$0x3] %vm26_vm2, %v25_v8  }
  0x87   :  { %34 = vst.msk [vmem:[#allocation0] sm:$0x3] %vm33_vm3, %v32_v7  }
  0x8e   :  { %v37_v9 = vld [vmem:[#allocation0] sm:$0x3] }
  0x8f   :  { %40 = vst [vmem:[%s68_s1] sm:$0x3] %v37_v9 }

// kernel: _lambda_.1
= control target key start
LH: loop header
LB: loop body
LE: loop exit
PB: predicated region body
PF: predicated region fallthrough
CT: control target
= control target key end

     0   :  { %12 = vsyncpa [#allocation3], 0  ;;  %s1802_s0 = inlined_call_operand.vmem [shape: f32[16,128], index: 0, kind: input, shape index: {}]   ;;  %s1803_s1 = inlined_call_operand.vmem [shape: f32[2,2,128], index: 1, kind: input, shape index: {}]   ;;  %s1804_s2 = inlined_call_operand.hbm [shape: f32[2,128,256], index: 2, kind: input, shape index: {}]   ;;  %s1805_s3 = inlined_call_operand.vmem [shape: f32[2,256], index: 3, kind: input, shape index: {}]   ;;  %s1806_s4 = inlined_call_operand.vmem [shape: f32[2,2,16,128], index: 4, kind: input, shape index: {}]   ;;  %s1807_s5 = inlined_call_operand.hbm [shape: f32[9,128,128], index: 5, kind: input, shape index: {}]   ;;  %s1808_s6 = inlined_call_operand.vmem [shape: f32[1,128], index: 6, kind: input, shape index: {}]   ;;  %s1809_s7 = inlined_call_operand.hbm [shape: f32[2,16,128], index: 7, kind: output, shape index: {}]  }
   0x1   :  { %13 = vsyncpa [#allocation6], 0 }
   0x2   :  { %14 = vsyncpa [#allocation4], 0 }
   0x3   :  { %16 = vsyncpa [#allocation4 + $0x1], 0  ;;  %s1541_s24 = smov 0   ;;  %s1543_s25 = smov 0  }
   0x4   :  { %s1545_s26 = smov 0   ;;  %s1547_s27 = smov 0  }
   0x5 LB: > { %s1562_s28 = sadd.s32 4294967295, %s1490_s27   ;;  %s1234_s29 = sadd.s32 4294967294, %s1490_s27   ;;  %s1490_s27 = sphi %s1547_s27, %s1816_s27   ;;  %s1486_s26 = sphi %s1545_s26, %s1815_s26   ;;  %s1482_s25 = sphi %s1543_s25, %s1814_s25   ;;  %s1478_s24 = sphi %s1541_s24, %s1813_s24  }
   0x6   : > { %s1566_s30 = sadd.s32 1, %s1490_s27   ;;  %s186_s8 = sadd.s32 1, %s1486_s26 }
   0x7   : > { %s183_s9 = ssub.s32 %s1490_s27, %s1566_s30  ;;  %p196_p0 = scmp.ne.s32.totalorder %s1486_s26, %s1482_s25 }
   0x8   : > { %p184_p1 = scmp.eq.s32.totalorder %s183_s9, 0  ;;  %p197_p2 = scmp.eq.s32.totalorder %s1562_s28, 1 }
   0x9   : > { %p202_p3 = scmp.ne.s32.totalorder %s1482_s25, %s1478_s24  ;;  %p203_p4 = scmp.eq.s32.totalorder %s1234_s29, 1 }
   0xa   : > { %s1577_s10 = scalar_select %p184_p1, %s1486_s26, %s186_s8  }
   0xb   : > { %p1579_p5 = por %p197_p2, %p196_p0  ;;  %p1583_p6 = por %p203_p4, %p202_p3 }
   0xc   : > { %p1235_p7 = scmp.ge.s32.totalorder %s1490_s27, 1  ;;  %p210_p8 = scmp.lt.s32.totalorder %s1490_s27, 3 }
   0xd   : > { %p1307_p9 = scmp.eq.s32.totalorder %s1562_s28, 0  ;;  %s224_s16 = sshll.u32 %s1804_s2, 4  ;;  %s225_s16 = int_to_ptr.hbm [resolvable:$true] %s224_s16 }
   0xe   : > { %p1590_p10 = pnand %p1235_p7, %p210_p8  ;;  %s1492_s17 = smov [#allocation2]  }
   0xf   : > { %s226_s18 = sshll.u32 %s1492_s17, 4  ;;  %s241_s21 = sshll.u32 %s1807_s5, 4  ;;  %s227_s18 = int_to_ptr.vmem [resolvable:$true] %s226_s18  ;;  %s242_s21 = int_to_ptr.hbm [resolvable:$true] %s241_s21 }
  0x10   : > { %p1296_p11 = pneg %p1590_p10  ;;  %s1493_s22 = smov 256  }
  0x11   : > { %s1494_s23 = smov 16   ;;  %s1495_s29 = smov [#allocation5]  }
  0x12   : > { %p1297_p12 = pnand %p1307_p9, %p1296_p11  ;;  %s243_s8 = sshll.u32 %s1495_s29, 4  ;;  %s244_s8 = int_to_ptr.vmem [resolvable:$true] %s243_s8 }
  0x13   : > { %s1496_s9 = smov 128   ;;  %s1497_s14 = smov 8  }
  0x14   : > { %1299 = dma.hbm_to_vmem [thread:$0]  (!%p1297_p12), %s225_s16, 8192, %s227_s18, [#allocation3], %s1493_s22, %s1493_s22, %s1494_s23  }
  0x15   : > { %1302 = dma.hbm_to_vmem [thread:$0]  (!%p1297_p12), %s242_s21, 18432, %s244_s8, [#allocation6], %s1496_s9, %s1496_s9, %s1497_s14  }
  0x16   : > { %277 = sbr.rel (%p1590_p10) target bundleno = 446 (0x1be), region = 48 }
  0x1b   : > { %1465 = dma.done.wait (%p1307_p9), [#allocation3], 8192  }
  0x1c   : > { %1467 = vsyncadd (%p1307_p9), [#allocation3], 4294959104 }
  0x1d   : > { %1469 = dma.done.wait (%p1307_p9), [#allocation6], 18432  }
  0x1e   : > { %1471 = vsyncadd (%p1307_p9), [#allocation6], 4294948864  ;;  %v359_v0 = vld [vmem:[#allocation2 + $0xf0] sm:$0xff]  ;;  %v357_v1 = vld [vmem:[#allocation2 + $0xe0] sm:$0xff]  ;;  %p319_p13 = scmp.lt.s32.totalorder %s1562_s28, 1  ;;  %vm610_vm6 = vcmask 1043456  }
  0x1f   : > { %361 = vmatpush.msra.mxu0 %v359_v0  ;;  %v360_v2 = vld [vmem:[#allocation2 + $0xf8] sm:$0xff]  ;;  %v358_v3 = vld [vmem:[#allocation2 + $0xe8] sm:$0xff]  ;;  %v355_v4 = vld [vmem:[#allocation2 + $0xd0] sm:$0xff]  ;;  %vm566_vm8 = vcmask 1044480   ;;  %vm691_vm9 = vcmask 1042432   ;;  %vm753_vm10 = vcmask 1040384  }
  0x20   : > { %381 = vmatpush.msra.mxu1 %v360_v2  ;;  %v356_v5 = vld [vmem:[#allocation2 + $0xd8] sm:$0xff]  ;;  %v353_v6 = vld [vmem:[#allocation2 + $0xc0] sm:$0xff]  ;;  %v354_v7 = vld [vmem:[#allocation2 + $0xc8] sm:$0xff]  ;;  %s1618_s13 = scalar_select %p319_p13, %s1562_s28, 1  ;;  %vm855_vm15 = vcmask 1046528  }
  0x21   : > { %362 = vmatpush.msra.mxu0 %v357_v1  ;;  %v351_v8 = vld [vmem:[#allocation2 + $0xb0] sm:$0xff]  ;;  %v352_v9 = vld [vmem:[#allocation2 + $0xb8] sm:$0xff]  ;;  %v349_v10 = vld [vmem:[#allocation2 + $0xa0] sm:$0xff]  ;;  %s1269_s21 = sshll.u32 %s1562_s28, 4 }
  0x22   : > { %382 = vmatpush.msra.mxu1 %v358_v3  ;;  %v350_v11 = vld [vmem:[#allocation2 + $0xa8] sm:$0xff]  ;;  %v347_v12 = vld [vmem:[#allocation2 + $0x90] sm:$0xff]  ;;  %v348_v13 = vld [vmem:[#allocation2 + $0x98] sm:$0xff]  ;;  %s1243_s15 = sshll.u32 %s1618_s13, 1  ;;  %s1268_s19 = sshll.u32 %s1618_s13, 5 }
  0x23   : > { %363 = vmatpush.msra.mxu0 %v355_v4  ;;  %v345_v14 = vld [vmem:[#allocation2 + $0x80] sm:$0xff]  ;;  %v442_v15 = vld [vmem:[#allocation2 + $0x1f0] sm:$0xff]  ;;  %v443_v16 = vld [vmem:[#allocation2 + $0x1f8] sm:$0xff]  ;;  %s322_s18 = scalar_lea.vmem %s1803_s1, %s1243_s15  ;;  %s1632_s22 = scalar_lea.vmem %s1806_s4, %s1268_s19 }
  0x24   : > { %383 = vmatpush.msra.mxu1 %v356_v5  ;;  %v346_v17 = vld [vmem:[#allocation2 + $0x88] sm:$0xff]  ;;  %447 = vmatpush.msra.mxu2 %v442_v15  ;;  %v440_v18 = vld [vmem:[#allocation2 + $0x1e0] sm:$0xff]  ;;  %v343_v20 = vld [vmem:[#allocation2 + $0x70] sm:$0xff]  ;;  %s316_s19 = sand.u32 1, %s1482_s25   ;;  %s1134_s29 = scalar_lea.hbm %s1809_s7, %s1269_s21 }
  0x25   : > { %364 = vmatpush.msra.mxu0 %v353_v6  ;;  %v441_v19 = vld [vmem:[#allocation2 + $0x1e8] sm:$0xff]  ;;  %467 = vmatpush.msra.mxu3 %v443_v16  ;;  %v438_v21 = vld [vmem:[#allocation2 + $0x1d0] sm:$0xff]  ;;  %v344_v22 = vld [vmem:[#allocation2 + $0x78] sm:$0xff]  ;;  %s1242_s20 = sshll.u32 %s316_s19, 4  ;;  %s1137_s14 = sshll.u32 %s1134_s29, 4  ;;  %s1138_s14 = int_to_ptr.hbm [resolvable:$true] %s1137_s14 }
  0x26   : > { %384 = vmatpush.msra.mxu1 %v354_v7  ;;  %448 = vmatpush.msra.mxu2 %v440_v18  ;;  %v439_v23 = vld [vmem:[#allocation2 + $0x1d8] sm:$0xff]  ;;  %v341_v24 = vld [vmem:[#allocation2 + $0x60] sm:$0xff]  ;;  %v342_v26 = vld [vmem:[#allocation2 + $0x68] sm:$0xff]  ;;  %s318_s8 = scalar_lea.vmem [#allocation7], %s1242_s20  ;;  %s1123_s28 = scalar_lea.sflag [#allocation4], %s316_s19 }
  0x27   : > { %365 = vmatpush.msra.mxu0 %v351_v8  ;;  %468 = vmatpush.msra.mxu3 %v441_v19  ;;  %v436_v25 = vld [vmem:[#allocation2 + $0x1c0] sm:$0xff]  ;;  %v437_v27 = vld [vmem:[#allocation2 + $0x1c8] sm:$0xff]  ;;  %v339_v28 = vld [vmem:[#allocation2 + $0x50] sm:$0xff]  ;;  %s1135_s9 = sshll.u32 %s318_s8, 4  ;;  %s1434_s13 = sshra.s32 %s1138_s14, 4  ;;  %s1136_s9 = int_to_ptr.vmem [resolvable:$true] %s1135_s9  ;;  %s1435_s13 = int_to_ptr.hbm [resolvable:$true] %s1434_s13 }
  0x28   : > { %385 = vmatpush.msra.mxu1 %v352_v9  ;;  %449 = vmatpush.msra.mxu2 %v438_v21  ;;  %v434_v29 = vld [vmem:[#allocation2 + $0x1b0] sm:$0xff]  ;;  %v340_v30 = vld [vmem:[#allocation2 + $0x58] sm:$0xff]  ;;  %v337_v32 = vld [vmem:[#allocation2 + $0x40] sm:$0xff]  ;;  %s1436_s15 = scalar_lea.hbm %s1435_s13, 16  ;;  %p1441_p3 = scmp.lt.s32.totalorder %s1435_s13, %s1809_s7 }
  0x29   : > { %366 = vmatpush.msra.mxu0 %v349_v10  ;;  %469 = vmatpush.msra.mxu3 %v439_v23  ;;  %v435_v31 = vld [vmem:[#allocation2 + $0x1b8] sm:$0xff]  ;;  %v432_v33 = vld [vmem:[#allocation2 + $0x1a0] sm:$0xff]  ;;  %v338_v34 = vld [vmem:[#allocation2 + $0x48] sm:$0xff]  ;;  %p1437_p0 = scmp.ne.s32.totalorder %s1435_s13, %s1436_s15 }
  0x2a   : > { %386 = vmatpush.msra.mxu1 %v350_v11  ;;  %450 = vmatpush.msra.mxu2 %v436_v25  ;;  %v433_v35 = vld [vmem:[#allocation2 + $0x1a8] sm:$0xff]  ;;  %v335_v36 = vld [vmem:[#allocation2 + $0x30] sm:$0xff]  ;;  %v336_v38 = vld [vmem:[#allocation2 + $0x38] sm:$0xff] }
  0x2b   : > { %367 = vmatpush.msra.mxu0 %v347_v12  ;;  %470 = vmatpush.msra.mxu3 %v437_v27  ;;  %v430_v37 = vld [vmem:[#allocation2 + $0x190] sm:$0xff]  ;;  %v431_v39 = vld [vmem:[#allocation2 + $0x198] sm:$0xff]  ;;  %v333_v40 = vld [vmem:[#allocation2 + $0x20] sm:$0xff]  ;;  %p1438_p1 = pnand %p1437_p0, %p1579_p5 }
  0x2c   : > { %387 = vmatpush.msra.mxu1 %v348_v13  ;;  %451 = vmatpush.msra.mxu2 %v434_v29  ;;  %v428_v41 = vld [vmem:[#allocation2 + $0x180] sm:$0xff]  ;;  %v334_v42 = vld [vmem:[#allocation2 + $0x28] sm:$0xff]  ;;  %v331_v44 = vld [vmem:[#allocation2 + $0x10] sm:$0xff] }
  0x2d   : > { %368 = vmatpush.msra.mxu0 %v345_v14  ;;  %471 = vmatpush.msra.mxu3 %v435_v31  ;;  %v429_v43 = vld [vmem:[#allocation2 + $0x188] sm:$0xff]  ;;  %v426_v45 = vld [vmem:[#allocation2 + $0x170] sm:$0xff]  ;;  %v332_v46 = vld [vmem:[#allocation2 + $0x18] sm:$0xff]  ;;  %p1439_p2 = pneg %p1438_p1 }
  0x2e   : > { %388 = vmatpush.msra.mxu1 %v346_v17  ;;  %452 = vmatpush.msra.mxu2 %v432_v33  ;;  %v427_v47 = vld [vmem:[#allocation2 + $0x178] sm:$0xff]  ;;  %v329_v48 = vld [vmem:[#allocation2] sm:$0xff]  ;;  %v330_v51 = vld [vmem:[#allocation2 + $0x8] sm:$0xff] }
  0x2f   : > { %369 = vmatpush.msra.mxu0 %v343_v20  ;;  %472 = vmatpush.msra.mxu3 %v433_v35  ;;  %v424_v49 = vld [vmem:[#allocation2 + $0x160] sm:$0xff]  ;;  %v642_v52 = vld [vmem:[#allocation5 + $0xf8] sm:$0xff]  ;;  %v425_v54 = vld [vmem:[#allocation2 + $0x168] sm:$0xff] }
  0x30   : > { %389 = vmatpush.msra.mxu1 %v344_v22  ;;  %453 = vmatpush.msra.mxu2 %v430_v37  ;;  %v1624_v50 = vld [vmem:[%s322_s18] sm:$0x3]  ;;  %v607_v53 = vld [vmem:[#allocation5 + $0x78] sm:$0xff]  ;;  %v641_v55 = vld [vmem:[#allocation5 + $0xf0] sm:$0xff]  ;;  %s1440_s18 = scalar_lea.hbm %s1809_s7, 32 }
  0x31   : > { %370 = vmatpush.msra.mxu0 %v341_v24  ;;  %473 = vmatpush.msra.mxu3 %v431_v39  ;;  %v422_v56 = vld [vmem:[#allocation2 + $0x150] sm:$0xff]  ;;  %v423_v58 = vld [vmem:[#allocation2 + $0x158] sm:$0xff]  ;;  %v640_v59 = vld [vmem:[#allocation5 + $0xe8] sm:$0xff]  ;;  %p1442_p4 = scmp.lt.s32.totalorder %s1440_s18, %s1436_s15 }
  0x32   : > { %390 = vmatpush.msra.mxu1 %v342_v26  ;;  %454 = vmatpush.msra.mxu2 %v428_v41  ;;  %v606_v57 = vld [vmem:[#allocation5 + $0x70] sm:$0xff]  ;;  %v420_v60 = vld [vmem:[#allocation2 + $0x140] sm:$0xff]  ;;  %v605_v61 = vld [vmem:[#allocation5 + $0x68] sm:$0xff] }
  0x33   : > { %371 = vmatpush.msra.mxu0 %v339_v28  ;;  %474 = vmatpush.msra.mxu3 %v429_v43  ;;  %v421_v62 = vld [vmem:[#allocation2 + $0x148] sm:$0xff]  ;;  %v639_v63 = vld [vmem:[#allocation5 + $0xe0] sm:$0xff]  ;;  %v418_v0 = vld [vmem:[#allocation2 + $0x130] sm:$0xff]  ;;  %p1443_p7 = por %p1442_p4, %p1441_p3 }
  0x34   : > { %391 = vmatpush.msra.mxu1 %v340_v30  ;;  %455 = vmatpush.msra.mxu2 %v426_v45  ;;  %v604_v1 = vld [vmem:[#allocation5 + $0x60] sm:$0xff]  ;;  %v419_v2 = vld [vmem:[#allocation2 + $0x138] sm:$0xff]  ;;  %v417_v6 = vld [vmem:[#allocation2 + $0x128] sm:$0xff] }
  0x35   : > { %372 = vmatpush.msra.mxu0 %v337_v32  ;;  %475 = vmatpush.msra.mxu3 %v427_v47  ;;  %v638_v3 = vld [vmem:[#allocation5 + $0xd8] sm:$0xff]  ;;  %v416_v4 = vld [vmem:[#allocation2 + $0x120] sm:$0xff]  ;;  %v637_v7 = vld [vmem:[#allocation5 + $0xd0] sm:$0xff]  ;;  %p1444_p8 = pnand %p1443_p7, %p1439_p2 }
  0x36   : > { %392 = vmatpush.msra.mxu1 %v338_v34  ;;  %456 = vmatpush.msra.mxu2 %v424_v49  ;;  %v603_v5 = vld [vmem:[#allocation5 + $0x58] sm:$0xff]  ;;  %v414_v8 = vld [vmem:[#allocation2 + $0x110] sm:$0xff]  ;;  %v636_v11 = vld [vmem:[#allocation5 + $0xc8] sm:$0xff] }
  0x37   : > { %373 = vmatpush.msra.mxu0 %v335_v36  ;;  %476 = vmatpush.msra.mxu3 %v425_v54  ;;  %v602_v9 = vld [vmem:[#allocation5 + $0x50] sm:$0xff]  ;;  %v415_v10 = vld [vmem:[#allocation2 + $0x118] sm:$0xff]  ;;  %v412_v12 = vld [vmem:[#allocation2 + $0x100] sm:$0xff] }
  0x38   : > { %393 = vmatpush.msra.mxu1 %v336_v38  ;;  %457 = vmatpush.msra.mxu2 %v422_v56  ;;  %v601_v13 = vld [vmem:[#allocation5 + $0x48] sm:$0xff]  ;;  %v635_v15 = vld [vmem:[#allocation5 + $0xc0] sm:$0xff]  ;;  %v725_v16 = vld [vmem:[#allocation5 + $0x178] sm:$0xff] }
  0x39   : > { %374 = vmatpush.msra.mxu0 %v333_v40  ;;  %477 = vmatpush.msra.mxu3 %v423_v58  ;;  %v413_v14 = vld [vmem:[#allocation2 + $0x108] sm:$0xff]  ;;  %v600_v17 = vld [vmem:[#allocation5 + $0x40] sm:$0xff]  ;;  %v787_v18 = vld [vmem:[#allocation5 + $0x1f8] sm:$0xff] }
  0x3a   : > { %394 = vmatpush.msra.mxu1 %v334_v42  ;;  %458 = vmatpush.msra.mxu2 %v420_v60  ;;  %v634_v19 = vld [vmem:[#allocation5 + $0xb8] sm:$0xff]  ;;  %v724_v20 = vld [vmem:[#allocation5 + $0x170] sm:$0xff]  ;;  %v723_v24 = vld [vmem:[#allocation5 + $0x168] sm:$0xff] }
  0x3b   : > { %375 = vmatpush.msra.mxu0 %v331_v44  ;;  %478 = vmatpush.msra.mxu3 %v421_v62  ;;  %v599_v21 = vld [vmem:[#allocation5 + $0x38] sm:$0xff]  ;;  %v786_v22 = vld [vmem:[#allocation5 + $0x1f0] sm:$0xff]  ;;  %v785_v26 = vld [vmem:[#allocation5 + $0x1e8] sm:$0xff] }
  0x3c   : > { %395 = vmatpush.msra.mxu1 %v332_v46  ;;  %459 = vmatpush.msra.mxu2 %v418_v0  ;;  %v633_v23 = vld [vmem:[#allocation5 + $0xb0] sm:$0xff]  ;;  %v632_v27 = vld [vmem:[#allocation5 + $0xa8] sm:$0xff]  ;;  %v722_v28 = vld [vmem:[#allocation5 + $0x160] sm:$0xff] }
  0x3d   : > { %376 = vmatpush.msra.mxu0 %v329_v48  ;;  %479 = vmatpush.msra.mxu3 %v419_v2  ;;  %v598_v25 = vld [vmem:[#allocation5 + $0x30] sm:$0xff]  ;;  %v597_v29 = vld [vmem:[#allocation5 + $0x28] sm:$0xff]  ;;  %v784_v30 = vld [vmem:[#allocation5 + $0x1e0] sm:$0xff] }
  0x3e   : > { %377 = vmatmul.f32.vlgmr.msra.gmra.mxu0 %v1624_v50  ;;  %396 = vmatpush.msra.mxu1 %v330_v51  ;;  %v631_v31 = vld [vmem:[#allocation5 + $0xa0] sm:$0xff]  ;;  %v721_v32 = vld [vmem:[#allocation5 + $0x158] sm:$0xff]  ;;  %v720_v36 = vld [vmem:[#allocation5 + $0x150] sm:$0xff] }
  0x3f   : > { %397 = vmatmul.f32.vlgmr.msra.gmra.mxu1 %v1624_v50  ;;  %643 = vmatpush.msrb.mxu0 %v642_v52  ;;  %v596_v33 = vld [vmem:[#allocation5 + $0x20] sm:$0xff]  ;;  %v783_v34 = vld [vmem:[#allocation5 + $0x1d8] sm:$0xff]  ;;  %v782_v38 = vld [vmem:[#allocation5 + $0x1d0] sm:$0xff] }
  0x40   : > { %666 = vmatpush.msrb.mxu1 %v607_v53  ;;  %460 = vmatpush.msra.mxu2 %v416_v4  ;;  %v630_v35 = vld [vmem:[#allocation5 + $0x98] sm:$0xff]  ;;  %v629_v39 = vld [vmem:[#allocation5 + $0x90] sm:$0xff]  ;;  %v719_v40 = vld [vmem:[#allocation5 + $0x148] sm:$0xff] }
  0x41   : > { %644 = vmatpush.msrb.mxu0 %v641_v55  ;;  %480 = vmatpush.msra.mxu3 %v417_v6  ;;  %v595_v37 = vld [vmem:[#allocation5 + $0x18] sm:$0xff]  ;;  %v594_v41 = vld [vmem:[#allocation5 + $0x10] sm:$0xff]  ;;  %v781_v42 = vld [vmem:[#allocation5 + $0x1c8] sm:$0xff] }
  0x42   : > { %667 = vmatpush.msrb.mxu1 %v606_v57  ;;  %461 = vmatpush.msra.mxu2 %v414_v8  ;;  %v628_v43 = vld [vmem:[#allocation5 + $0x88] sm:$0xff]  ;;  %v718_v44 = vld [vmem:[#allocation5 + $0x140] sm:$0xff]  ;;  %v717_v48 = vld [vmem:[#allocation5 + $0x138] sm:$0xff] }
  0x43   : > { %645 = vmatpush.msrb.mxu0 %v640_v59  ;;  %481 = vmatpush.msra.mxu3 %v415_v10  ;;  %v593_v45 = vld [vmem:[#allocation5 + $0x8] sm:$0xff]  ;;  %v780_v46 = vld [vmem:[#allocation5 + $0x1c0] sm:$0xff]  ;;  %v779_v51 = vld [vmem:[#allocation5 + $0x1b8] sm:$0xff] }
  0x44   : > { %668 = vmatpush.msrb.mxu1 %v605_v61  ;;  %462 = vmatpush.msra.mxu2 %v412_v12  ;;  %v627_v47 = vld [vmem:[#allocation5 + $0x80] sm:$0xff]  ;;  %v829_v52 = vld [vmem:[#allocation5 + $0x278] sm:$0xff]  ;;  %v499_v55 = vld [vmem:[%s1802_s0 + $0x8] sm:$0xff] }
  0x45   : > { %646 = vmatpush.msrb.mxu0 %v639_v63  ;;  %482 = vmatpush.msra.mxu3 %v413_v14  ;;  %v592_v49 = vld [vmem:[#allocation5] sm:$0xff]  ;;  %v885_v53 = vld [vmem:[#allocation5 + $0x2f8] sm:$0xff]  ;;  %v716_v56 = vld [vmem:[#allocation5 + $0x130] sm:$0xff] }
  0x46   : > { %669 = vmatpush.msrb.mxu1 %v604_v1  ;;  %726 = vmatpush.msrb.mxu2 %v725_v16  ;;  %v498_v54 = vld [vmem:[%s1802_s0] sm:$0xff]  ;;  %v778_v57 = vld [vmem:[#allocation5 + $0x1b0] sm:$0xff]  ;;  %v501_v61 = vld [vmem:[%s1632_s22 + $0x8] sm:$0xff] }
  0x47   : > { %647 = vmatpush.msrb.mxu0 %v638_v3  ;;  %788 = vmatpush.msrb.mxu3 %v787_v18  ;;  %v500_v58 = vld [vmem:[%s1632_s22] sm:$0xff]  ;;  %v828_v59 = vld [vmem:[#allocation5 + $0x270] sm:$0xff]  ;;  %v715_v62 = vld [vmem:[#allocation5 + $0x128] sm:$0xff] }
  0x48   : > { %670 = vmatpush.msrb.mxu1 %v603_v5  ;;  %727 = vmatpush.msrb.mxu2 %v724_v20  ;;  %v884_v60 = vld [vmem:[#allocation5 + $0x2f0] sm:$0xff]  ;;  %v777_v63 = vld [vmem:[#allocation5 + $0x1a8] sm:$0xff]  ;;  %v714_v2 = vld [vmem:[#allocation5 + $0x120] sm:$0xff]  ;;  %v502_v4 = vadd.f32 %v500_v58, %v498_v54  ;;  %v503_v5 = vadd.f32 %v501_v61, %v499_v55  ;;  %v445_v55 = vrot.slane %v1624_v50, 1 }
  0x49   : > { %648 = vmatpush.msrb.mxu0 %v637_v7  ;;  %789 = vmatpush.msrb.mxu3 %v786_v22  ;;  %v827_v0 = vld [vmem:[#allocation5 + $0x268] sm:$0xff]  ;;  %v776_v3 = vld [vmem:[#allocation5 + $0x1a0] sm:$0xff]  ;;  %v713_v8 = vld [vmem:[#allocation5 + $0x118] sm:$0xff] }
  0x4a   : > { %671 = vmatpush.msrb.mxu1 %v602_v9  ;;  %728 = vmatpush.msrb.mxu2 %v723_v24  ;;  %v883_v1 = vld [vmem:[#allocation5 + $0x2e8] sm:$0xff]  ;;  %v826_v6 = vld [vmem:[#allocation5 + $0x260] sm:$0xff]  ;;  %v775_v9 = vld [vmem:[#allocation5 + $0x198] sm:$0xff]  ;;  %v504_v16 = vmul.f32 0.2, %v502_v4  ;;  %v1498_v24 = vmov 16.0  }
  0x4b   : > { %649 = vmatpush.msrb.mxu0 %v636_v11  ;;  %790 = vmatpush.msrb.mxu3 %v785_v26  ;;  %v882_v7 = vld [vmem:[#allocation5 + $0x2e0] sm:$0xff]  ;;  %v825_v10 = vld [vmem:[#allocation5 + $0x258] sm:$0xff]  ;;  %v712_v12 = vld [vmem:[#allocation5 + $0x110] sm:$0xff]  ;;  %1354 = vrcp.f32 %v1498_v24 }
  0x4c   : > { %672 = vmatpush.msrb.mxu1 %v601_v13  ;;  %729 = vmatpush.msrb.mxu2 %v722_v28  ;;  %v881_v11 = vld [vmem:[#allocation5 + $0x2d8] sm:$0xff]  ;;  %v774_v13 = vld [vmem:[#allocation5 + $0x190] sm:$0xff]  ;;  %v711_v18 = vld [vmem:[#allocation5 + $0x108] sm:$0xff]  ;;  %v506_v22 = vmax.f32 %v502_v4, %v504_v16 }
  0x4d   : > { %650 = vmatpush.msrb.mxu0 %v635_v15  ;;  %791 = vmatpush.msrb.mxu3 %v784_v30  ;;  %v824_v14 = vld [vmem:[#allocation5 + $0x250] sm:$0xff]  ;;  %v823_v20 = vld [vmem:[#allocation5 + $0x248] sm:$0xff]  ;;  %v822_v54 = vld [vmem:[#allocation5 + $0x240] sm:$0xff] }
  0x4e   : > { %673 = vmatpush.msrb.mxu1 %v600_v17  ;;  %730 = vmatpush.msrb.mxu2 %v721_v32  ;;  %v880_v15 = vld [vmem:[#allocation5 + $0x2d0] sm:$0xff]  ;;  %v505_v17 = vmul.f32 0.2, %v503_v5  ;;  %v877_v61 = vld [vmem:[#allocation5 + $0x2b8] sm:$0xff]  ;;  %v939_v50 = vld [vmem:[#allocation5 + $0x368] sm:$0xff] }
  0x4f   : > { %651 = vmatpush.msrb.mxu0 %v634_v19  ;;  %792 = vmatpush.msrb.mxu3 %v783_v34  ;;  %v773_v19 = vld [vmem:[#allocation5 + $0x188] sm:$0xff]  ;;  %v816_v16 = vld [vmem:[#allocation5 + $0x210] sm:$0xff]  ;;  %v982_v24 = vld [vmem:[#allocation5 + $0x3c0] sm:$0xff] }
  0x50   : > { %674 = vmatpush.msrb.mxu1 %v599_v21  ;;  %731 = vmatpush.msrb.mxu2 %v720_v36  ;;  %v879_v21 = vld [vmem:[#allocation5 + $0x2c8] sm:$0xff] }
  0x51   : > { %652 = vmatpush.msrb.mxu0 %v633_v23  ;;  %793 = vmatpush.msrb.mxu3 %v782_v38  ;;  %v507_v23 = vmax.f32 %v503_v5, %v505_v17  ;;  %v875_v4 = vld [vmem:[#allocation5 + $0x2a8] sm:$0xff]  ;;  %v938_v5 = vld [vmem:[#allocation5 + $0x360] sm:$0xff]  ;;  %v872_v17 = vld [vmem:[#allocation5 + $0x290] sm:$0xff] }
  0x52   : > { %675 = vmatpush.msrb.mxu1 %v598_v25  ;;  %732 = vmatpush.msrb.mxu2 %v719_v40 }
  0x53   : > { %653 = vmatpush.msrb.mxu0 %v632_v27  ;;  %794 = vmatpush.msrb.mxu3 %v781_v42  ;;  %v508_v25 = vadd.f32 %v507_v23, %v506_v22  ;;  %v1355_v27 = vpop.eup %1354 }
  0x54   : > { %676 = vmatpush.msrb.mxu1 %v597_v29  ;;  %733 = vmatpush.msrb.mxu2 %v718_v44  ;;  %v516_v29 = vmul.f32 16.0, %v1355_v27  ;;  %vm520_vm0 = vweird.f32 %v1355_v27 }
  0x55   : > { %654 = vmatpush.msrb.mxu0 %v631_v31  ;;  %795 = vmatpush.msrb.mxu3 %v780_v46  ;;  %v509_v26 = vrot.slane %v508_v25, 4 }
  0x56   : > { %677 = vmatpush.msrb.mxu1 %v596_v33  ;;  %734 = vmatpush.msrb.mxu2 %v717_v48  ;;  %v517_v31 = vsub.f32 1.0, %v516_v29 }
  0x57   : > { %655 = vmatpush.msrb.mxu0 %v630_v35  ;;  %796 = vmatpush.msrb.mxu3 %v779_v51  ;;  %v510_v28 = vadd.f32 %v509_v26, %v508_v25  ;;  %v814_v25 = vld [vmem:[#allocation5 + $0x200] sm:$0xff] }
  0x58   : > { %678 = vmatpush.msrb.mxu1 %v595_v37  ;;  %735 = vmatpush.msrb.mxu2 %v716_v56  ;;  %v518_v33 = vmul.f32 %v1355_v27, %v517_v31  ;;  %v878_v56 = vld [vmem:[#allocation5 + $0x2c0] sm:$0xff]  ;;  %v980_v31 = vld [vmem:[#allocation5 + $0x3b0] sm:$0xff] }
  0x59   : > { %656 = vmatpush.msrb.mxu0 %v629_v39  ;;  %797 = vmatpush.msrb.mxu3 %v778_v57  ;;  %v511_v30 = vrot.slane %v510_v28, 2  ;;  %v941_v57 = vld [vmem:[#allocation5 + $0x378] sm:$0xff]  ;;  %v870_v26 = vld [vmem:[#allocation5 + $0x280] sm:$0xff] }
  0x5a   : > { %679 = vmatpush.msrb.mxu1 %v594_v41  ;;  %736 = vmatpush.msrb.mxu2 %v715_v62  ;;  %v519_v35 = vadd.f32 %v1355_v27, %v518_v33  ;;  %v940_v62 = vld [vmem:[#allocation5 + $0x370] sm:$0xff]  ;;  %v979_v33 = vld [vmem:[#allocation5 + $0x3a8] sm:$0xff] }
  0x5b   : > { %657 = vmatpush.msrb.mxu0 %v628_v43  ;;  %798 = vmatpush.msrb.mxu3 %v777_v63  ;;  %v512_v32 = vadd.f32 %v511_v30, %v510_v28  ;;  %v988_v63 = vld [vmem:[#allocation5 + $0x3f0] sm:$0xff]  ;;  %v981_v28 = vld [vmem:[#allocation5 + $0x3b8] sm:$0xff] }
  0x5c   : > { %680 = vmatpush.msrb.mxu1 %v593_v45  ;;  %737 = vmatpush.msrb.mxu2 %v714_v2  ;;  %v1642_v37 = vsel %vm520_vm0, %v1355_v27, %v519_v35  ;;  %v987_v2 = vld [vmem:[#allocation5 + $0x3e8] sm:$0xff]  ;;  %v933_v27 = vld [vmem:[#allocation5 + $0x338] sm:$0xff]  ;;  %v932_v30 = vld [vmem:[#allocation5 + $0x330] sm:$0xff] }
  0x5d   : > { %658 = vmatpush.msrb.mxu0 %v627_v47  ;;  %799 = vmatpush.msrb.mxu3 %v776_v3  ;;  %v513_v34 = vrot.slane %v512_v32, 1  ;;  %v819_v3 = vld [vmem:[#allocation5 + $0x228] sm:$0xff]  ;;  %v930_v35 = vld [vmem:[#allocation5 + $0x320] sm:$0xff] }
  0x5e   : > { %681 = vmatpush.msrb.mxu1 %v592_v49  ;;  %738 = vmatpush.msrb.mxu2 %v713_v8  ;;  %v874_v8 = vld [vmem:[#allocation5 + $0x2a0] sm:$0xff] }
  0x5f   : > { %830 = vmatpush.msra.mxu0 %v829_v52  ;;  %800 = vmatpush.msrb.mxu3 %v775_v9  ;;  %v514_v36 = vadd.f32 %v513_v34, %v512_v32  ;;  %v710_v52 = vld [vmem:[#allocation5 + $0x100] sm:$0xff]  ;;  %v937_v9 = vld [vmem:[#allocation5 + $0x358] sm:$0xff]  ;;  %v931_v32 = vld [vmem:[#allocation5 + $0x328] sm:$0xff] }
  0x60   : > { %886 = vmatpush.msra.mxu1 %v885_v53  ;;  %739 = vmatpush.msrb.mxu2 %v712_v12  ;;  %v772_v53 = vld [vmem:[#allocation5 + $0x180] sm:$0xff]  ;;  %v873_v12 = vld [vmem:[#allocation5 + $0x298] sm:$0xff] }
  0x61   : > { %831 = vmatpush.msra.mxu0 %v828_v59  ;;  %801 = vmatpush.msrb.mxu3 %v774_v13  ;;  %v522_v38 = vmul.f32 %v1642_v37, %v514_v36  ;;  %v989_v59 = vld [vmem:[#allocation5 + $0x3f8] sm:$0xff]  ;;  %v936_v13 = vld [vmem:[#allocation5 + $0x350] sm:$0xff]  ;;  %v978_v36 = vld [vmem:[#allocation5 + $0x3a0] sm:$0xff] }
  0x62   : > { %887 = vmatpush.msra.mxu1 %v884_v60  ;;  %740 = vmatpush.msrb.mxu2 %v711_v18  ;;  %v821_v60 = vld [vmem:[#allocation5 + $0x238] sm:$0xff]  ;;  %v935_v18 = vld [vmem:[#allocation5 + $0x348] sm:$0xff] }
  0x63   : > { %832 = vmatpush.msra.mxu0 %v827_v0  ;;  %802 = vmatpush.msrb.mxu3 %v773_v19  ;;  %v1645_v39 = vsub.f32 %v506_v22, %v522_v38  ;;  %v1647_v40 = vsub.f32 %v507_v23, %v522_v38  ;;  %v820_v0 = vld [vmem:[#allocation5 + $0x230] sm:$0xff]  ;;  %v983_v19 = vld [vmem:[#allocation5 + $0x3c8] sm:$0xff]  ;;  %v934_v23 = vld [vmem:[#allocation5 + $0x340] sm:$0xff] }
  0x64   : > { %888 = vmatpush.msra.mxu1 %v883_v1  ;;  %741 = vmatpush.msrb.mxu2 %v710_v52  ;;  %v876_v1 = vld [vmem:[#allocation5 + $0x2b0] sm:$0xff] }
  0x65   : > { %833 = vmatpush.msra.mxu0 %v826_v6  ;;  %v525_v41 = vmul.f32 %v1645_v39, %v1645_v39  ;;  %v526_v42 = vmul.f32 %v1647_v40, %v1647_v40  ;;  %803 = vmatpush.msrb.mxu3 %v772_v53  ;;  %v986_v6 = vld [vmem:[#allocation5 + $0x3e0] sm:$0xff] }
  0x66   : > { %889 = vmatpush.msra.mxu1 %v882_v7  ;;  %463 = vmatmul.f32.vlgmr.msra.gmra.mxu2 %v445_v55  ;;  %v818_v7 = vld [vmem:[#allocation5 + $0x220] sm:$0xff] }
  0x67   : > { %834 = vmatpush.msra.mxu0 %v825_v10  ;;  %v527_v43 = vadd.f32 %v526_v42, %v525_v41  ;;  %483 = vmatmul.f32.vlgmr.msra.gmra.mxu3 %v445_v55  ;;  %v985_v10 = vld [vmem:[#allocation5 + $0x3d8] sm:$0xff]  ;;  %v555_v41 = vlaneseq  ;;  %v926_v53 = vld [vmem:[#allocation5 + $0x300] sm:$0xff] }
  0x68   : > { %890 = vmatpush.msra.mxu1 %v881_v11  ;;  %942 = vmatpush.msra.mxu2 %v941_v57  ;;  %v817_v11 = vld [vmem:[#allocation5 + $0x218] sm:$0xff] }
  0x69   : > { %835 = vmatpush.msra.mxu0 %v824_v14  ;;  %v528_v44 = vrot.slane %v527_v43, 4  ;;  %990 = vmatpush.msra.mxu3 %v989_v59  ;;  %v984_v14 = vld [vmem:[#allocation5 + $0x3d0] sm:$0xff]  ;;  %v929_v42 = vld [vmem:[#allocation5 + $0x318] sm:$0xff] }
  0x6a   : > { %891 = vmatpush.msra.mxu1 %v880_v15  ;;  %943 = vmatpush.msra.mxu2 %v940_v62 }
  0x6b   : > { %836 = vmatpush.msra.mxu0 %v823_v20  ;;  %v529_v45 = vadd.f32 %v528_v44, %v527_v43  ;;  %991 = vmatpush.msra.mxu3 %v988_v63  ;;  %v815_v20 = vld [vmem:[#allocation5 + $0x208] sm:$0xff]  ;;  %v977_v43 = vld [vmem:[#allocation5 + $0x398] sm:$0xff]  ;;  %v928_v44 = vld [vmem:[#allocation5 + $0x310] sm:$0xff] }
  0x6c   : > { %892 = vmatpush.msra.mxu1 %v879_v21  ;;  %944 = vmatpush.msra.mxu2 %v939_v50  ;;  %v871_v21 = vld [vmem:[#allocation5 + $0x288] sm:$0xff] }
  0x6d   : > { %v530_v46 = vrot.slane %v529_v45, 2  ;;  %837 = vmatpush.msra.mxu0 %v822_v54  ;;  %992 = vmatpush.msra.mxu3 %v987_v2  ;;  %v974_v54 = vld [vmem:[#allocation5 + $0x380] sm:$0xff] }
  0x6e   : > { %893 = vmatpush.msra.mxu1 %v878_v56  ;;  %945 = vmatpush.msra.mxu2 %v938_v5 }
  0x6f   : > { %v531_v47 = vadd.f32 %v530_v46, %v529_v45  ;;  %838 = vmatpush.msra.mxu0 %v821_v60  ;;  %993 = vmatpush.msra.mxu3 %v986_v6  ;;  %v976_v45 = vld [vmem:[#allocation5 + $0x390] sm:$0xff]  ;;  %v403_v46 = vld [vmem:[%s1805_s3] ss:$2 sm:$0x3] }
  0x70   : > { %894 = vmatpush.msra.mxu1 %v877_v61  ;;  %946 = vmatpush.msra.mxu2 %v937_v9  ;;  %v405_v52 = vperm.slane %v403_v46, 0  ;;  %v406_v56 = vperm.slane %v403_v46, 1 }
  0x71   : > { %v532_v48 = vrot.slane %v531_v47, 1  ;;  %839 = vmatpush.msra.mxu0 %v820_v0  ;;  %994 = vmatpush.msra.mxu3 %v985_v10 }
  0x72   : > { %895 = vmatpush.msra.mxu1 %v876_v1  ;;  %947 = vmatpush.msra.mxu2 %v936_v13 }
  0x73   : > { %v533_v49 = vadd.f32 %v532_v48, %v531_v47  ;;  %840 = vmatpush.msra.mxu0 %v819_v3  ;;  %995 = vmatpush.msra.mxu3 %v984_v14  ;;  %v927_v47 = vld [vmem:[#allocation5 + $0x308] sm:$0xff] }
  0x74   : > { %896 = vmatpush.msra.mxu1 %v875_v4  ;;  %948 = vmatpush.msra.mxu2 %v935_v18  ;;  %v975_v48 = vld [vmem:[#allocation5 + $0x388] sm:$0xff] }
  0x75   : > { %v534_v51 = vmul.f32 %v533_v49, %v1642_v37  ;;  %841 = vmatpush.msra.mxu0 %v818_v7  ;;  %996 = vmatpush.msra.mxu3 %v983_v19 }
  0x76   : > { %897 = vmatpush.msra.mxu1 %v874_v8  ;;  %949 = vmatpush.msra.mxu2 %v934_v23 }
  0x77   : > { %v1655_v58 = vadd.f32 1e-05, %v534_v51  ;;  %842 = vmatpush.msra.mxu0 %v817_v11  ;;  %997 = vmatpush.msra.mxu3 %v982_v24  ;;  %v556_v51 = vshrl.u32 %v555_v41, 7 }
  0x78   : > { %898 = vmatpush.msra.mxu1 %v873_v12  ;;  %950 = vmatpush.msra.mxu2 %v933_v27  ;;  %v1035_v27 = vld [vmem:[#allocation5 + $0x468] sm:$0xff] }
  0x79   : > { %1356 = vrsqrt.f32 %v1655_v58  ;;  %843 = vmatpush.msra.mxu0 %v816_v16  ;;  %998 = vmatpush.msra.mxu3 %v981_v28  ;;  %vm542_vm1 = vweird.f32 %v1655_v58  ;;  %v558_v61 = vshrl.u32 %v556_v51, 2  ;;  %v560_v62 = vand.u32 3, %v556_v51 }
  0x7a   : > { %899 = vmatpush.msra.mxu1 %v872_v17  ;;  %951 = vmatpush.msra.mxu2 %v932_v30  ;;  %v1676_v8 = vadd.s32 8, %v556_v51 }
  0x7b   : > { %844 = vmatpush.msra.mxu0 %v815_v20  ;;  %999 = vmatpush.msra.mxu3 %v980_v31  ;;  %v572_v3 = vadd.s32 4294967295, %v558_v61  ;;  %v1672_v4 = vadd.s32 4294967295, %v560_v62  ;;  %v1674_v7 = vadd.s32 1, %v560_v62 }
  0x7c   : > { %900 = vmatpush.msra.mxu1 %v871_v21  ;;  %952 = vmatpush.msra.mxu2 %v931_v32  ;;  %v1033_v32 = vld [vmem:[#allocation5 + $0x458] sm:$0xff] }
  0x7d   : > { %845 = vmatpush.msra.mxu0 %v814_v25  ;;  %1000 = vmatpush.msra.mxu3 %v979_v33  ;;  %vm574_vm4 = vcmp.ge.s32.totalorder %v572_v3, 0  ;;  %vm582_vm5 = vcmp.ge.s32.totalorder %v1672_v4, 0  ;;  %vm703_vm7 = vcmp.lt.s32.totalorder %v1674_v7, 4  ;;  %v1036_v25 = vld [vmem:[#allocation5 + $0x470] sm:$0xff] }
  0x7e   : > { %901 = vmatpush.msra.mxu1 %v870_v26  ;;  %953 = vmatpush.msra.mxu2 %v930_v35  ;;  %vm584_vm11 = vmand %vm574_vm4, %vm582_vm5  ;;  %v1032_v35 = vld [vmem:[#allocation5 + $0x450] sm:$0xff] }
  0x7f   : > { %v1658_v15 = vpop.eup %1356  ;;  %1001 = vmatpush.msra.mxu3 %v978_v36  ;;  %vm705_vm12 = vmand %vm574_vm4, %vm703_vm7  ;;  %v1031_v36 = vld [vmem:[#allocation5 + $0x448] sm:$0xff] }
  0x80   : > { %v537_v22 = vmul.f32 %v1658_v15, %v1655_v58  ;;  %954 = vmatpush.msra.mxu2 %v929_v42  ;;  %vm543_vm2 = vweird.f32 %v1658_v15  ;;  %v559_v42 = vshrl.u32 %v1676_v8, 2 }
  0x81   : > { %1002 = vmatpush.msra.mxu3 %v977_v43  ;;  %vm544_vm3 = vmor %vm542_vm1, %vm543_vm2  ;;  %v1030_v43 = vld [vmem:[#allocation5 + $0x440] sm:$0xff] }
  0x82   : > { %v538_v29 = vmul.f32 %v1658_v15, %v537_v22  ;;  %955 = vmatpush.msra.mxu2 %v928_v44  ;;  %v1037_v22 = vld [vmem:[#allocation5 + $0x478] sm:$0xff]  ;;  %v912_v46 = vadd.s32 1, %v559_v42 }
  0x83   : > { %1003 = vmatpush.msra.mxu3 %v976_v45  ;;  %v1029_v45 = vld [vmem:[#allocation5 + $0x438] sm:$0xff] }
  0x84   : > { %v539_v34 = vmul.f32 0.5, %v538_v29  ;;  %956 = vmatpush.msra.mxu2 %v927_v47  ;;  %v1034_v29 = vld [vmem:[#allocation5 + $0x460] sm:$0xff]  ;;  %v1028_v47 = vld [vmem:[#allocation5 + $0x430] sm:$0xff]  ;;  %vm916_vm0 = vcmp.lt.s32.totalorder %v912_v46, 4 }
  0x85   : > { %1004 = vmatpush.msra.mxu3 %v975_v48  ;;  %v1027_v48 = vld [vmem:[#allocation5 + $0x428] sm:$0xff] }
  0x86   : > { %v540_v38 = vsub.f32 1.5, %v539_v34  ;;  %957 = vmatpush.msra.mxu2 %v926_v53  ;;  %v1024_v53 = vld [vmem:[#allocation5 + $0x410] sm:$0xff] }
  0x87   : > { %1005 = vmatpush.msra.mxu3 %v974_v54  ;;  %v1023_v54 = vld [vmem:[#allocation5 + $0x408] sm:$0xff] }
  0x88   : > { %v541_v49 = vmul.f32 %v1658_v15, %v540_v38 }
  0x8a   : > { %v545_v58 = vsel %vm544_vm3, %v1658_v15, %v541_v49  ;;  %v1026_v49 = vld [vmem:[#allocation5 + $0x420] sm:$0xff] }
  0x8b   : > { %v546_v1 = vmul.f32 %v545_v58, %v1645_v39  ;;  %v547_v50 = vmul.f32 %v545_v58, %v1647_v40  ;;  %v561_v40 = vand.u32 3, %v1676_v8 }
  0x8d   : > { %v581_v26 = vadd.s32 4294967295, %v561_v40  ;;  %v1715_v28 = vadd.s32 1, %v561_v40 }
  0x8f   : > { %vm583_vm13 = vcmp.ge.s32.totalorder %v581_v26, 0  ;;  %vm704_vm14 = vcmp.lt.s32.totalorder %v1715_v28, 4 }
  0x90   : > { %vm920_vm1 = vmand %vm916_vm0, %vm583_vm13 }
  0x91   : > { %vm1018_vm2 = vmand %vm916_vm0, %vm704_vm14 }
  0xbb   : > { %v378_v55 = vpop.f32.mrf.mxu0 }
  0xbc   : > { %v401_v57 = vmul.f32 0.17677669, %v378_v55  ;;  %v398_v59 = vpop.f32.mrf.mxu1  ;;  %v1022_v55 = vld [vmem:[#allocation5 + $0x400] sm:$0xff] }
  0xbd   : > { %v402_v60 = vmul.f32 0.17677669, %v398_v59 }
  0xbe   : > { %v409_v63 = vadd.f32 %v405_v52, %v401_v57  ;;  %v1025_v52 = vld [vmem:[#allocation5 + $0x418] sm:$0xff] }
  0xbf   : > { %v410_v0 = vadd.f32 %v406_v56, %v402_v60 }
  0xc0   : > { %v548_v2 = vadd.f32 1.0, %v409_v63 }
  0xc1   : > { %v552_v6 = vperm.slane %v410_v0, 0 }
  0xc2   : > { %v549_v5 = vperm.slane %v548_v2, 0 }
  0xc4   : > { %v550_v9 = vmul.f32 %v549_v5, %v546_v1  ;;  %v551_v10 = vmul.f32 %v549_v5, %v547_v50 }
  0xc6   : > { %v1679_v11 = vadd.f32 %v552_v6, %v550_v9  ;;  %v1681_v39 = vadd.f32 %v552_v6, %v551_v10 }
  0xc8   : > { %v608_v12 = vrot.slane %v1681_v39, 4  ;;  %v611_v13 = vrot.slane %v1679_v11, 4  ;;  %v563_v14 = vrot.slane %v1681_v39, 3  ;;  %v567_v15 = vrot.slane %v1679_v11, 3 }
  0xc9   : > { %v689_v16 = vrot.slane %v1681_v39, 5  ;;  %v692_v17 = vrot.slane %v1679_v11, 5  ;;  %v751_v18 = vrot.slane %v1681_v39, 7  ;;  %v754_v19 = vrot.slane %v1679_v11, 7 }
  0xca   : > { %v1700_v20 = vsel %vm610_vm6, %v608_v12, %v611_v13  ;;  %v1703_v21 = vsel %vm566_vm8, %v563_v14, %v567_v15  ;;  %v612_v30 = vsel %vm610_vm6, %v611_v13, %v608_v12  ;;  %v568_v31 = vsel %vm566_vm8, %v567_v15, %v563_v14 }
  0xcb   : > { %1247 = vmatmul.msk.f32.vlgmr.msrb.gmra.mxu0 %vm574_vm4, %v1700_v20  ;;  %1248 = vmatmul.msk.f32.vlgmr.msrb.gmra.mxu1 %vm584_vm11, %v1703_v21  ;;  %v1709_v23 = vsel %vm691_vm9, %v689_v16, %v692_v17  ;;  %v758_v24 = vsel %vm753_vm10, %v751_v18, %v754_v19  ;;  %v693_v33 = vsel %vm691_vm9, %v692_v17, %v689_v16  ;;  %v856_v38 = vrot.slane %v1679_v11, 1 }
  0xcc   : > { %1250 = vmatmul.msk.f32.vlgmr.msrb.gmra.mxu2 %vm705_vm12, %v1709_v23  ;;  %1252 = vmatmul.msk.f32.vlgmr.msrb.gmra.mxu3 %vm582_vm5, %v758_v24  ;;  %v755_v34 = vsel %vm753_vm10, %v754_v19, %v751_v18  ;;  %v857_v41 = vrot.slane %v1681_v39, 1 }
  0xcd   : > { %1038 = vmatpush.msrb.mxu0 %v1037_v22  ;;  %1270 = vmatpush.msrb.mxu1 %v1037_v22 }
  0xce   : > { %v858_v44 = vsel %vm855_vm15, %v856_v38, %v857_v41  ;;  %v862_v51 = vsel %vm855_vm15, %v857_v41, %v856_v38 }
  0xcf   : > { %1039 = vmatpush.msrb.mxu0 %v1036_v25  ;;  %1271 = vmatpush.msrb.mxu1 %v1036_v25 }
  0xd1   : > { %1040 = vmatpush.msrb.mxu0 %v1035_v27  ;;  %1272 = vmatpush.msrb.mxu1 %v1035_v27  ;;  %v1261_v27 = vld [vmem:[%s1632_s22 + $0x10] sm:$0xff] }
  0xd3   : > { %1041 = vmatpush.msrb.mxu0 %v1034_v29  ;;  %1273 = vmatpush.msrb.mxu1 %v1034_v29 }
  0xd4   : > { %662 = vmatmul.f32.gmra.mxu0 %v612_v30  ;;  %1249 = vmatmul.msk.f32.gmra.mxu1 %vm583_vm13, %v568_v31 }
  0xd5   : > { %1251 = vmatmul.msk.f32.gmra.mxu2 %vm704_vm14, %v693_v33  ;;  %1253 = vmatmul.msk.f32.gmra.mxu3 %vm583_vm13, %v755_v34 }
  0xd6   : > { %1042 = vmatpush.msrb.mxu0 %v1033_v32  ;;  %1274 = vmatpush.msrb.mxu1 %v1033_v32 }
  0xd8   : > { %1043 = vmatpush.msrb.mxu0 %v1032_v35  ;;  %1275 = vmatpush.msrb.mxu1 %v1032_v35 }
  0xda   : > { %1044 = vmatpush.msrb.mxu0 %v1031_v36  ;;  %1276 = vmatpush.msrb.mxu1 %v1031_v36 }
  0xdc   : > { %1045 = vmatpush.msrb.mxu0 %v1030_v43  ;;  %1277 = vmatpush.msrb.mxu1 %v1030_v43 }
  0xdd   : > { %846 = vmatmul.f32.vlgmr.msra.gmra.mxu0 %v1679_v11  ;;  %1254 = vmatmul.msk.f32.vlgmr.msra.gmra.mxu1 %vm703_vm7, %v858_v44 }
  0xde   : > { %1256 = vmatmul.msk.f32.vlgmr.msra.gmra.mxu2 %vm582_vm5, %v568_v31  ;;  %1006 = vmatmul.f32.vlgmr.msra.gmra.mxu3 %v612_v30  ;;  %v1262_v30 = vld [vmem:[%s1632_s22 + $0x18] sm:$0xff] }
  0xdf   : > { %1046 = vmatpush.msrb.mxu0 %v1029_v45  ;;  %1278 = vmatpush.msrb.mxu1 %v1029_v45 }
  0xe1   : > { %1047 = vmatpush.msrb.mxu0 %v1028_v47  ;;  %1279 = vmatpush.msrb.mxu1 %v1028_v47 }
  0xe3   : > { %1048 = vmatpush.msrb.mxu0 %v1027_v48  ;;  %1280 = vmatpush.msrb.mxu1 %v1027_v48 }
  0xe5   : > { %1049 = vmatpush.msrb.mxu0 %v1026_v49  ;;  %1281 = vmatpush.msrb.mxu1 %v1026_v49 }
  0xe6   : > { %849 = vmatmul.f32.gmra.mxu0 %v1681_v39  ;;  %1255 = vmatmul.msk.f32.gmra.mxu1 %vm704_vm14, %v862_v51 }
  0xe7   : > { %1257 = vmatmul.msk.f32.gmra.mxu2 %vm920_vm1, %v1703_v21  ;;  %1258 = vmatmul.msk.f32.gmra.mxu3 %vm916_vm0, %v1700_v20 }
  0xe8   : > { %1050 = vmatpush.msrb.mxu0 %v1025_v52  ;;  %1282 = vmatpush.msrb.mxu1 %v1025_v52 }
  0xe9   : > { %v1750_v56 = vpop.f32.mrf.mxu2 }
  0xea   : > { %1051 = vmatpush.msrb.mxu0 %v1024_v53  ;;  %1283 = vmatpush.msrb.mxu1 %v1024_v53  ;;  %v1752_v57 = vpop.f32.mrf.mxu3 }
  0xec   : > { %1052 = vmatpush.msrb.mxu0 %v1023_v54  ;;  %1284 = vmatpush.msrb.mxu1 %v1023_v54 }
  0xee   : > { %1053 = vmatpush.msrb.mxu0 %v1022_v55  ;;  %1285 = vmatpush.msrb.mxu1 %v1022_v55 }
  0xef   : > { %1259 = vmatmul.msk.f32.vlgmr.msrb.gmra.mxu0 %vm703_vm7, %v693_v33  ;;  %1260 = vmatmul.msk.f32.vlgmr.msrb.gmra.mxu1 %vm1018_vm2, %v1709_v23  ;;  %v1353_v23 = vld [vmem:[%s1808_s6] ss:$0 sm:$0xff] }
 0x148   : > { %v660_v59 = vpop.f32.mrf.mxu0  ;;  %v683_v58 = vpop.f32.mrf.mxu1 }
 0x149   : > { %v684_v50 = vadd.f32 %v683_v58, %v660_v59 }
 0x14f   : > { %v743_v60 = vpop.f32.mrf.mxu2  ;;  %v805_v61 = vpop.f32.mrf.mxu3 }
 0x150   : > { %v749_v4 = vadd.f32 %v743_v60, %v684_v50 }
 0x151   : > { %v663_v62 = vpop.f32.mrf.mxu0  ;;  %v686_v63 = vpop.f32.mrf.mxu1 }
 0x152   : > { %v687_v5 = vadd.f32 %v686_v63, %v663_v62  ;;  %v811_v6 = vadd.f32 %v805_v61, %v749_v4 }
 0x158   : > { %v746_v0 = vpop.f32.mrf.mxu2  ;;  %v808_v1 = vpop.f32.mrf.mxu3 }
 0x159   : > { %v750_v7 = vadd.f32 %v746_v0, %v687_v5 }
 0x15a   : > { %v847_v2 = vpop.f32.mrf.mxu0  ;;  %v903_v3 = vpop.f32.mrf.mxu1 }
 0x15b   : > { %v853_v8 = vadd.f32 %v847_v2, %v811_v6  ;;  %v812_v11 = vadd.f32 %v808_v1, %v750_v7  ;;  %v1246_v1 = vld [vmem:[%s1805_s3 + $0x1] ss:$2 sm:$0x3]  ;;  %v487_v2 = vmul.f32 0.17677669, %v1750_v56 }
 0x15d   : > { %v909_v12 = vadd.f32 %v903_v3, %v853_v8  ;;  %v492_v3 = vperm.slane %v1246_v1, 0  ;;  %v488_v8 = vmul.f32 0.17677669, %v1752_v57 }
 0x15f   : > { %v496_v6 = vadd.f32 %v492_v3, %v487_v2 }
 0x161   : > { %v959_v9 = vpop.f32.mrf.mxu2  ;;  %v1007_v10 = vpop.f32.mrf.mxu3 }
 0x162   : > { %v965_v14 = vadd.f32 %v959_v9, %v909_v12 }
 0x163   : > { %v850_v39 = vpop.f32.mrf.mxu0  ;;  %v906_v40 = vpop.f32.mrf.mxu1 }
 0x164   : > { %v854_v13 = vadd.f32 %v850_v39, %v812_v11  ;;  %v1013_v17 = vadd.f32 %v1007_v10, %v965_v14  ;;  %v1113_v10 = vadd.f32 1.0, %v496_v6 }
 0x166   : > { %v910_v15 = vadd.f32 %v906_v40, %v854_v13  ;;  %v1114_v40 = vperm.slane %v1113_v10, 0 }
 0x16a   : > { %v962_v16 = vpop.f32.mrf.mxu2  ;;  %v1010_v19 = vpop.f32.mrf.mxu3 }
 0x16b   : > { %v966_v18 = vadd.f32 %v962_v16, %v910_v15 }
 0x16c   : > { %v1055_v20 = vpop.f32.mrf.mxu0  ;;  %v1058_v24 = vpop.f32.mrf.mxu1 }
 0x16d   : > { %v1014_v21 = vadd.f32 %v1010_v19, %v966_v18  ;;  %v1061_v22 = vadd.f32 %v1055_v20, %v1013_v17 }
 0x16f   : > { %v1063_v25 = vmul.f32 0.083333336, %v1061_v22  ;;  %v1062_v26 = vadd.f32 %v1058_v24, %v1014_v21 }
 0x171   : > { %v1069_v28 = vadd.f32 %v1353_v23, %v1063_v25  ;;  %v1064_v29 = vmul.f32 0.083333336, %v1062_v26 }
 0x173   : > { %v1074_v31 = vadd.f32 %v1261_v27, %v1069_v28  ;;  %v1070_v32 = vadd.f32 %v1353_v23, %v1064_v29 }
 0x175   : > { %v1076_v33 = vmul.f32 0.2, %v1074_v31  ;;  %v1075_v34 = vadd.f32 %v1262_v30, %v1070_v32 }
 0x177   : > { %v1077_v35 = vmul.f32 0.2, %v1075_v34  ;;  %v1078_v36 = vmax.f32 %v1074_v31, %v1076_v33 }
 0x179   : > { %v1079_v38 = vmax.f32 %v1075_v34, %v1077_v35 }
 0x17b   : > { %v1080_v41 = vadd.f32 %v1079_v38, %v1078_v36 }
 0x17d   : > { %v1081_v42 = vrot.slane %v1080_v41, 4 }
 0x17f   : > { %v1082_v43 = vadd.f32 %v1081_v42, %v1080_v41 }
 0x181   : > { %v1083_v44 = vrot.slane %v1082_v43, 2 }
 0x183   : > { %v1084_v45 = vadd.f32 %v1083_v44, %v1082_v43 }
 0x185   : > { %v1085_v46 = vrot.slane %v1084_v45, 1 }
 0x187   : > { %v1086_v47 = vadd.f32 %v1085_v46, %v1084_v45 }
 0x189   : > { %v1087_v48 = vmul.f32 %v1086_v47, %v1642_v37 }
 0x18b   : > { %v1088_v49 = vsub.f32 %v1078_v36, %v1087_v48  ;;  %v1089_v51 = vsub.f32 %v1079_v38, %v1087_v48 }
 0x18d   : > { %v1090_v52 = vmul.f32 %v1088_v49, %v1088_v49  ;;  %v1091_v53 = vmul.f32 %v1089_v51, %v1089_v51 }
 0x18f   : > { %v1092_v54 = vadd.f32 %v1091_v53, %v1090_v52 }
 0x191   : > { %v1093_v55 = vrot.slane %v1092_v54, 4 }
 0x193   : > { %v1094_v59 = vadd.f32 %v1093_v55, %v1092_v54 }
 0x195   : > { %v1095_v58 = vrot.slane %v1094_v59, 2 }
 0x197   : > { %v1096_v60 = vadd.f32 %v1095_v58, %v1094_v59 }
 0x199   : > { %v1097_v61 = vrot.slane %v1096_v60, 1 }
 0x19b   : > { %v1098_v62 = vadd.f32 %v1097_v61, %v1096_v60 }
 0x19d   : > { %v1099_v63 = vmul.f32 %v1098_v62, %v1642_v37  ;;  %v493_v37 = vperm.slane %v1246_v1, 1 }
 0x19f   : > { %v1100_v0 = vadd.f32 1e-05, %v1099_v63  ;;  %v497_v39 = vadd.f32 %v493_v37, %v488_v8 }
 0x1a1   : > { %1358 = vrsqrt.f32 %v1100_v0  ;;  %vm1107_vm4 = vweird.f32 %v1100_v0  ;;  %v1117_v13 = vperm.slane %v497_v39, 0 }
 0x1a7   : > { %v1359_v50 = vpop.eup %1358 }
 0x1a8   : > { %v1102_v4 = vmul.f32 %v1359_v50, %v1100_v0  ;;  %vm1108_vm3 = vweird.f32 %v1359_v50 }
 0x1a9   : > { %vm1109_vm5 = vmor %vm1107_vm4, %vm1108_vm3 }
 0x1aa   : > { %v1103_v5 = vmul.f32 %v1359_v50, %v1102_v4 }
 0x1ac   : > { %v1104_v7 = vmul.f32 0.5, %v1103_v5 }
 0x1ae   : > { %v1105_v9 = vsub.f32 1.5, %v1104_v7 }
 0x1b0   : > { %v1106_v11 = vmul.f32 %v1359_v50, %v1105_v9 }
 0x1b2   : > { %v1110_v56 = vsel %vm1109_vm5, %v1359_v50, %v1106_v11 }
 0x1b3   : > { %v1111_v12 = vmul.f32 %v1110_v56, %v1088_v49  ;;  %v1112_v57 = vmul.f32 %v1110_v56, %v1089_v51 }
 0x1b5   : > { %v1115_v14 = vmul.f32 %v1114_v40, %v1111_v12  ;;  %v1116_v15 = vmul.f32 %v1114_v40, %v1112_v57 }
 0x1b7   : > { %v1118_v16 = vadd.f32 %v1117_v13, %v1115_v14  ;;  %v1119_v17 = vadd.f32 %v1117_v13, %v1116_v15 }
 0x1b9   : > { %1120 = vst [vmem:[%s318_s8] sm:$0xff] %v1118_v16 }
 0x1ba   : > { %1121 = vst [vmem:[%s318_s8 + $0x8] sm:$0xff] %v1119_v17 }
 0x1bb   : > { %1447 = shalt.err (!%p1444_p8)
}
 0x1bc   : > { %s1499_s19 = smov 128   ;;  %s1500_s22 = smov 8  }
 0x1bd   : > { %1294 = dma.vmem_to_hbm [thread:$0]  (%p1579_p5), %s1136_s9, 256, %s1138_s14, %s1123_s28, %s1499_s19, %s1499_s19, %s1500_s22  }
 0x1be PF: > { %p1311_p9 = scmp.ge.s32.totalorder %s1490_s27, 2  ;;  %s1152_s23 = sand.u32 1, %s1478_s24  }
 0x1bf   : > { %s1153_s29 = scalar_lea.sflag [#allocation4], %s1152_s23 }
 0x1c0   : > { %p1304_p10 = pnand %p1311_p9, %p1583_p6 }
 0x1c2   : > { %p1305_p11 = pneg %p1304_p10 }
 0x1c4   : > { %1473 = dma.done.wait (%p1305_p11), %s1153_s29, 256  }
 0x1c5   : > { %1475 = vsyncadd (%p1305_p11), %s1153_s29, 4294967040  ;;  %p19_p12 = scmp.ge.s32.totalorder %s1566_s30, 4   ;;  %s1813_s24 = smov %s1482_s25 }
 0x1c6   : > { %s1814_s25 = smov %s1486_s26  ;;  %s1815_s26 = smov %s1577_s10 }
 0x1c7   : > { %s1816_s27 = smov %s1566_s30  ;;  %21 = sbr.rel (!%p19_p12) target bundleno = 5 (0x5), region = 106 }
 0x1cc   :  { %1159 = vsyncpa [#allocation3], 1 }
 0x1cd   :  { %1161 = vsyncpa [#allocation3 + $0x1], 1 }
 0x1ce   :  { %1162 = vsyncpa [#allocation6], 1 }
 0x1cf   :  { %1163 = vsyncpa [#allocation4], 1 }
 0x1d0   :  { %1165 = vsyncpa [#allocation4 + $0x1], 1 }

</bundles_post_ra>
